<compile_context>
chip_gen: v5e
topology: v5e:2x2
jax: 0.10.0
libtpu: 0.0.40
codegen_flags: <defaults>
</compile_context>

<pallas_src>
import jax
import jax.numpy as jnp
from jax import lax
from jax.experimental import pallas as pl
from jax.experimental.pallas import tpu as pltpu  # noqa: F401  (TPU backend)

# ---- static problem sizes ---------------------------------------------------
B = 2
H = 4
W = 4
N = H * W            # tokens per image
C = 16               # dim
NUM_HEADS = 4
DH = C // NUM_HEADS
MLP_RATIO = 4.0
HIDDEN = int(C * MLP_RATIO)     # 64
ETA = 1.0
LN_EPS = 1e-5        # nn.LayerNorm default
BN_EPS = 1e-5        # nn.BatchNorm2d default
BN_TOK = B * N       # 32 flattened tokens

# ---- packed-parameter slab layouts -------------------------------------------
# vector slab (VEC_ROWS, C):
#   rows 0..14   : per-channel vectors (LN weights/biases, biases, gammas, BN)
#   rows 16..31  : (C, C) per-row head temperature
#   rows 32..47  : (C, C) additive cross-head mask (0 / -1e30)
#   rows 48..111 : (HIDDEN, C) fc2 weight (transposed)
#   rows 112..   : 2 convs x 9 taps x (B*N, C) boundary-masked tap-weight planes
R_LN1W, R_LN1B, R_PROJB, R_G1 = 0, 1, 2, 3
R_LN3W, R_LN3B, R_C1B, R_BNS, R_BNB = 4, 5, 6, 7, 8
R_C2B, R_G3, R_LN2W, R_LN2B, R_FC2B, R_G2 = 9, 10, 11, 12, 13, 14
R_TEMP = 16
R_MASK = 32
R_FC2W = 48
R_TAPS = R_FC2W + HIDDEN                  # 112
VEC_ROWS = R_TAPS + 2 * 9 * BN_TOK        # 688

# weight-matrix slab (WM_ROWS, 128): qkv / proj / fc1 weights + fc1 bias,
# each starting at lane 0 and at 16-row-aligned sublane offsets.
WM_LANES = 128
WM_ROWS = 3 * C + 8                       # 56 (rows 0..15 qkv^T, 16..31 proj^T,
                                          #     32..47 fc1^T, 48 fc1_b)


# ---- in-kernel math helpers (pure jnp; traced inside the Pallas kernel) -----
def _erf(z):
    # Abramowitz & Stegun 7.1.26, |err| < 1.5e-7 -> matches torch's exact
    # erf-based GELU to float32 precision using only exp (EUP friendly).
    a1, a2, a3, a4, a5 = 0.254829592, -0.284496736, 1.421413741, -1.453152027, 1.061405429
    p = 0.3275911
    s = jnp.where(z >= 0.0, 1.0, -1.0)
    za = jnp.abs(z)
    t = 1.0 / (1.0 + p * za)
    poly = ((((a5 * t + a4) * t + a3) * t + a2) * t + a1) * t
    return s * (1.0 - poly * jnp.exp(-za * za))


def _gelu(v):
    return 0.5 * v * (1.0 + _erf(v * 0.7071067811865476))


def _layernorm(v, w, b):
    mu = jnp.mean(v, axis=-1, keepdims=True)
    var = jnp.mean(jnp.square(v - mu), axis=-1, keepdims=True)
    return (v - mu) * lax.rsqrt(var + LN_EPS) * w + b


# ---- the fused XCABlock kernel (single invocation, no grid) ------------------
def xcablock_kernel(x_ref, wm_ref, vec_ref, out_ref):
    x = x_ref[...]                                           # (B*N, C) float32

    # ---- unpack packed parameter slabs (static VMEM slices) ------------------
    qkv_wt  = wm_ref[pl.ds(0, C), pl.ds(0, 3 * C)]           # (C, 3C)
    proj_wt = wm_ref[pl.ds(C, C), pl.ds(0, C)]               # (C, C)
    fc1_wt  = wm_ref[pl.ds(2 * C, C), pl.ds(0, HIDDEN)]      # (C, HIDDEN)
    fc1_b   = wm_ref[pl.ds(3 * C, 1), pl.ds(0, HIDDEN)]      # (1, HIDDEN)

    vrows = vec_ref[pl.ds(0, 16), :]                         # (16, C): all small vectors
    ln1_w, ln1_b  = vrows[R_LN1W:R_LN1W + 1], vrows[R_LN1B:R_LN1B + 1]
    proj_b, g1    = vrows[R_PROJB:R_PROJB + 1], vrows[R_G1:R_G1 + 1]
    ln3_w, ln3_b  = vrows[R_LN3W:R_LN3W + 1], vrows[R_LN3B:R_LN3B + 1]
    c1_b          = vrows[R_C1B:R_C1B + 1]
    bn_s, bn_bias = vrows[R_BNS:R_BNS + 1], vrows[R_BNB:R_BNB + 1]
    c2_b, g3      = vrows[R_C2B:R_C2B + 1], vrows[R_G3:R_G3 + 1]
    ln2_w, ln2_b  = vrows[R_LN2W:R_LN2W + 1], vrows[R_LN2B:R_LN2B + 1]
    fc2_b, g2     = vrows[R_FC2B:R_FC2B + 1], vrows[R_G2:R_G2 + 1]

    temp_mat = vec_ref[pl.ds(R_TEMP, C), :]                  # (C, C)
    mask_mat = vec_ref[pl.ds(R_MASK, C), :]                  # (C, C)
    fc2_wt   = vec_ref[pl.ds(R_FC2W, HIDDEN), :]             # (HIDDEN, C)

    # ---------------- branch 1: x = x + gamma1 * XCA(LN1(x)) ------------------
    xn = _layernorm(x, ln1_w, ln1_b)
    qkv = jnp.dot(xn, qkv_wt, preferred_element_type=jnp.float32)     # (B*N, 3C)
    q = qkv[:, 0:C]
    k = qkv[:, C:2 * C]
    v = qkv[:, 2 * C:3 * C]

    outs = []
    for b in range(B):                                       # static tiny loop over batch
        qb = q[b * N:(b + 1) * N]                            # (N, C)
        kb = k[b * N:(b + 1) * N]
        vb = v[b * N:(b + 1) * N]
        # F.normalize(dim=-1) on the (dh, N)-transposed heads == per-column L2
        # normalization over this batch element's tokens.
        qn = qb / jnp.maximum(jnp.sqrt(jnp.sum(qb * qb, axis=0, keepdims=True)), 1e-12)
        kn = kb / jnp.maximum(jnp.sqrt(jnp.sum(kb * kb, axis=0, keepdims=True)), 1e-12)
        # Full cross-covariance; only per-head diagonal blocks survive the mask.
        attn = lax.dot_general(qn, kn, (((0,), (0,)), ((), ())),
                               preferred_element_type=jnp.float32)    # (C, C)
        attn = attn * temp_mat + mask_mat                    # per-head temp + -inf cross-head
        attn = attn - jnp.max(attn, axis=-1, keepdims=True)
        attn = jnp.exp(attn)                                 # masked entries -> exactly 0
        attn = attn / jnp.sum(attn, axis=-1, keepdims=True)
        # out[n, c] = sum_e v[n, e] * attn[c, e]  (cross-head entries are zero)
        outs.append(lax.dot_general(vb, attn, (((1,), (1,)), ((), ())),
                                    preferred_element_type=jnp.float32))  # (N, C)
    att = jnp.concatenate(outs, axis=0)                      # (B*N, C)
    att = jnp.dot(att, proj_wt, preferred_element_type=jnp.float32) + proj_b
    x = x + g1 * att

    # ---------------- branch 2: x = x + gamma3 * LPI(LN3(x), H, W) ------------
    def dwconv3x3(img_flat, conv_idx, bias):
        # 3x3 depthwise conv on the flattened (B*N, C) token slab, fully in
        # registers: 9 static circular row-shifts, each multiplied by a
        # host-precomputed (boundary-mask x tap-weight) plane.  Valid taps
        # never cross an image/batch boundary, so the circular wrap is always
        # masked (zeroed) by the folded plane.
        acc = jnp.zeros((BN_TOK, C), jnp.float32)
        for t in range(9):
            dr, dc = t // 3 - 1, t % 3 - 1
            off = (dr * W + dc) % BN_TOK
            if off == 0:
                s = img_flat
            else:
                s = jnp.concatenate([img_flat[off:, :], img_flat[:off, :]], axis=0)
            tapw = vec_ref[pl.ds(R_TAPS + (conv_idx * 9 + t) * BN_TOK, BN_TOK), :]
            acc = acc + s * tapw
        return acc + bias

    xn3 = _layernorm(x, ln3_w, ln3_b)
    y = dwconv3x3(xn3, 0, c1_b)
    y = _gelu(y)
    y = y * bn_s + bn_bias                                   # folded eval-mode BatchNorm
    y = dwconv3x3(y, 1, c2_b)
    x = x + g3 * y

    # ---------------- branch 3: x = x + gamma2 * MLP(LN2(x)) ------------------
    xn2 = _layernorm(x, ln2_w, ln2_b)
    h1 = jnp.dot(xn2, fc1_wt, preferred_element_type=jnp.float32) + fc1_b
    h1 = _gelu(h1)
    y2 = jnp.dot(h1, fc2_wt, preferred_element_type=jnp.float32) + fc2_b
    x = x + g2 * y2

    out_ref[...] = x


# ---- wrapper -----------------------------------------------------------------
def xca_block_pallas(x, wmats, vecs):
    x2d = x.reshape(B * N, C)
    out = pl.pallas_call(
        xcablock_kernel,
        out_shape=jax.ShapeDtypeStruct((B * N, C), jnp.float32),
        in_specs=[
            pl.BlockSpec((B * N, C), lambda: (0, 0)),
            pl.BlockSpec((WM_ROWS, WM_LANES), lambda: (0, 0)),
            pl.BlockSpec((VEC_ROWS, C), lambda: (0, 0)),
        ],
        out_specs=pl.BlockSpec((B * N, C), lambda: (0, 0)),
    )(x2d, wmats, vecs)
    return out.reshape(B, N, C)


# ---- deterministic parameter construction (torch layout) ---------------------
def init_params(key):
    ks = jax.random.split(key, 24)

    def nrm(k, shape, s=0.05):
        return s * jax.random.normal(k, shape, jnp.float32)

    tp = dict(
        ln1_w=1.0 + 0.1 * jax.random.normal(ks[0], (C,), jnp.float32),
        ln1_b=nrm(ks[1], (C,), 0.1),
        ln2_w=1.0 + 0.1 * jax.random.normal(ks[2], (C,), jnp.float32),
        ln2_b=nrm(ks[3], (C,), 0.1),
        ln3_w=1.0 + 0.1 * jax.random.normal(ks[4], (C,), jnp.float32),
        ln3_b=nrm(ks[5], (C,), 0.1),
        qkv_w=nrm(ks[6], (3 * C, C)),                 # nn.Linear(dim, 3*dim, bias=False)
        temperature=1.0 + 0.1 * jax.random.normal(ks[7], (NUM_HEADS, 1, 1), jnp.float32),
        proj_w=nrm(ks[8], (C, C)),
        proj_b=nrm(ks[9], (C,), 0.02),
        conv1_w=nrm(ks[10], (C, 1, 3, 3), 0.2),       # depthwise (groups=C)
        conv1_b=nrm(ks[11], (C,), 0.02),
        conv2_w=nrm(ks[12], (C, 1, 3, 3), 0.2),
        conv2_b=nrm(ks[13], (C,), 0.02),
        bn_w=1.0 + 0.1 * jax.random.normal(ks[14], (C,), jnp.float32),
        bn_b=nrm(ks[15], (C,), 0.1),
        bn_m=nrm(ks[16], (C,), 0.1),
        bn_v=1.0 + 0.1 * jnp.abs(jax.random.normal(ks[17], (C,), jnp.float32)),
        fc1_w=nrm(ks[18], (HIDDEN, C)),
        fc1_b=nrm(ks[19], (HIDDEN,), 0.02),
        fc2_w=nrm(ks[20], (C, HIDDEN)),
        fc2_b=nrm(ks[21], (C,), 0.02),
        gamma1=ETA * jnp.ones((C,), jnp.float32),
        gamma2=ETA * jnp.ones((C,), jnp.float32),
        gamma3=ETA * jnp.ones((C,), jnp.float32),
    )
    return tp


# ---- pack torch-layout params into the two kernel slabs (done ONCE at init) ---
def pack_params(tp):
    # 128-lane weight slab.
    wm = jnp.zeros((WM_ROWS, WM_LANES), jnp.float32)
    wm = wm.at[0:C, 0:3 * C].set(tp['qkv_w'].T)
    wm = wm.at[C:2 * C, 0:C].set(tp['proj_w'].T)
    wm = wm.at[2 * C:3 * C, 0:HIDDEN].set(tp['fc1_w'].T)
    wm = wm.at[3 * C, 0:HIDDEN].set(tp['fc1_b'])

    # Block-diagonal attention helpers.
    head = jnp.arange(C) // DH
    temp_per_c = tp['temperature'].reshape(NUM_HEADS)[head]             # (C,)
    temp_mat = jnp.broadcast_to(temp_per_c[:, None], (C, C)).astype(jnp.float32)
    mask_mat = jnp.where(head[:, None] == head[None, :], 0.0, -1e30).astype(jnp.float32)

    # Fold eval-mode BatchNorm into scale/bias.
    bn_scale = tp['bn_w'] / jnp.sqrt(tp['bn_v'] + BN_EPS)
    bn_bias = tp['bn_b'] - tp['bn_m'] * bn_scale

    # Depthwise conv taps folded with per-token image-boundary validity masks:
    # tap plane t of conv j has shape (B*N, C) = valid(token, t) * w_j[tap t, channel].
    n_idx = jnp.arange(BN_TOK)
    row = (n_idx // W) % H
    col = n_idx % W

    def tap_planes(conv_w):                                  # conv_w: (C, 1, 3, 3)
        w9 = jnp.transpose(conv_w[:, 0], (1, 2, 0)).reshape(9, C)   # row t = kh*3 + kw
        planes = []
        for t in range(9):
            dr, dc = t // 3 - 1, t % 3 - 1
            valid = ((row + dr >= 0) & (row + dr < H) &
                     (col + dc >= 0) & (col + dc < W)).astype(jnp.float32)   # (B*N,)
            planes.append(valid[:, None] * w9[t][None, :])   # (B*N, C)
        return jnp.concatenate(planes, axis=0)               # (9*B*N, C)

    taps = jnp.concatenate([tap_planes(tp['conv1_w']),
                            tap_planes(tp['conv2_w'])], axis=0)      # (18*B*N, C)

    vec = jnp.zeros((VEC_ROWS, C), jnp.float32)
    vec = vec.at[R_LN1W].set(tp['ln1_w'])
    vec = vec.at[R_LN1B].set(tp['ln1_b'])
    vec = vec.at[R_PROJB].set(tp['proj_b'])
    vec = vec.at[R_G1].set(tp['gamma1'])
    vec = vec.at[R_LN3W].set(tp['ln3_w'])
    vec = vec.at[R_LN3B].set(tp['ln3_b'])
    vec = vec.at[R_C1B].set(tp['conv1_b'])
    vec = vec.at[R_BNS].set(bn_scale)
    vec = vec.at[R_BNB].set(bn_bias)
    vec = vec.at[R_C2B].set(tp['conv2_b'])
    vec = vec.at[R_G3].set(tp['gamma3'])
    vec = vec.at[R_LN2W].set(tp['ln2_w'])
    vec = vec.at[R_LN2B].set(tp['ln2_b'])
    vec = vec.at[R_FC2B].set(tp['fc2_b'])
    vec = vec.at[R_G2].set(tp['gamma2'])
    vec = vec.at[R_TEMP:R_TEMP + C].set(temp_mat)
    vec = vec.at[R_MASK:R_MASK + C].set(mask_mat)
    vec = vec.at[R_FC2W:R_FC2W + HIDDEN].set(tp['fc2_w'].T)
    vec = vec.at[R_TAPS:R_TAPS + 2 * 9 * BN_TOK].set(taps)
    return wm, vec


# ---- pure-JAX reference mirroring the PyTorch forward (for self-check) -------
def ref_forward(x, tp):
    def ln(v, w, b):
        mu = v.mean(-1, keepdims=True)
        var = ((v - mu) ** 2).mean(-1, keepdims=True)
        return (v - mu) / jnp.sqrt(var + LN_EPS) * w + b

    def gelu(v):
        return 0.5 * v * (1.0 + lax.erf(v / jnp.sqrt(2.0)))

    # XCA branch
    xn = ln(x, tp['ln1_w'], tp['ln1_b'])
    qkv = jnp.einsum('bnc,dc->bnd', xn, tp['qkv_w'])
    qkv = qkv.reshape(B, N, 3, NUM_HEADS, DH).transpose(2, 0, 3, 1, 4)
    q, k, v = qkv[0], qkv[1], qkv[2]                     # (B, h, N, dh)
    q = jnp.swapaxes(q, -2, -1)                          # (B, h, dh, N)
    k = jnp.swapaxes(k, -2, -1)
    v = jnp.swapaxes(v, -2, -1)
    q = q / jnp.maximum(jnp.linalg.norm(q, axis=-1, keepdims=True), 1e-12)
    k = k / jnp.maximum(jnp.linalg.norm(k, axis=-1, keepdims=True), 1e-12)
    attn = jnp.einsum('bhdn,bhen->bhde', q, k) * tp['temperature'][None]
    attn = jax.nn.softmax(attn, axis=-1)
    o = jnp.einsum('bhde,bhen->bhdn', attn, v)
    o = o.transpose(0, 3, 1, 2).reshape(B, N, C)
    o = o @ tp['proj_w'].T + tp['proj_b']
    x = x + tp['gamma1'] * o

    # LPI branch
    xn = ln(x, tp['ln3_w'], tp['ln3_b'])
    img = xn.transpose(0, 2, 1).reshape(B, C, H, W)

    def dwconv(z, w, b):
        y = lax.conv_general_dilated(z, w, (1, 1), 'SAME', feature_group_count=C,
                                     dimension_numbers=('NCHW', 'OIHW', 'NCHW'))
        return y + b[None, :, None, None]

    y = dwconv(img, tp['conv1_w'], tp['conv1_b'])
    y = gelu(y)
    y = ((y - tp['bn_m'][None, :, None, None])
         / jnp.sqrt(tp['bn_v'] + BN_EPS)[None, :, None, None]
         * tp['bn_w'][None, :, None, None] + tp['bn_b'][None, :, None, None])
    y = dwconv(y, tp['conv2_w'], tp['conv2_b'])
    y = y.reshape(B, C, N).transpose(0, 2, 1)
    x = x + tp['gamma3'] * y

    # MLP branch
    xn = ln(x, tp['ln2_w'], tp['ln2_b'])
    h1 = gelu(xn @ tp['fc1_w'].T + tp['fc1_b'])
    y = h1 @ tp['fc2_w'].T + tp['fc2_b']
    x = x + tp['gamma2'] * y
    return x


if __name__ == "__main__":
    key = jax.random.PRNGKey(0)
    kx, kparam = jax.random.split(key)
    x = jax.random.normal(kx, (B, N, C), jnp.float32)

    torch_params = init_params(kparam)
    wmats, vecs = pack_params(torch_params)

    out = xca_block_pallas(x, wmats, vecs)
    out = jax.block_until_ready(out)

    ref = ref_forward(x, torch_params)
    err = float(jnp.max(jnp.abs(out - ref)))
    assert err < 1e-4, f"kernel/reference mismatch: max abs err = {err}"
    print("KERNEL_OK")
</pallas_src>

<mosaic_0001>
module attributes {stable_mosaic.version = 11 : i64} {
  func.func @xcablock_kernel(%arg0: memref<32x16xf32, #tpu.memory_space<vmem>>, %arg1: memref<56x128xf32, #tpu.memory_space<vmem>>, %arg2: memref<688x16xf32, #tpu.memory_space<vmem>>, %arg3: memref<32x16xf32, #tpu.memory_space<vmem>>) attributes {dimension_semantics = [], scalar_prefetch = 0 : i64, scratch_operands = 0 : i64, tpu.core_type = #tpu.core_type<tc>} {
    %c0 = arith.constant 0 : index
    %c0_0 = arith.constant 0 : index
    %0 = vector.load %arg0[%c0, %c0_0] : memref<32x16xf32, #tpu.memory_space<vmem>>, vector<32x16xf32>
    %c0_1 = arith.constant 0 : index
    %c0_2 = arith.constant 0 : index
    %1 = vector.load %arg1[%c0_1, %c0_2] : memref<56x128xf32, #tpu.memory_space<vmem>>, vector<16x48xf32>
    %c16 = arith.constant 16 : index
    %c0_3 = arith.constant 0 : index
    %2 = vector.load %arg1[%c16, %c0_3] : memref<56x128xf32, #tpu.memory_space<vmem>>, vector<16x16xf32>
    %c32 = arith.constant 32 : index
    %c0_4 = arith.constant 0 : index
    %3 = vector.load %arg1[%c32, %c0_4] : memref<56x128xf32, #tpu.memory_space<vmem>>, vector<16x64xf32>
    %c48 = arith.constant 48 : index
    %c0_5 = arith.constant 0 : index
    %4 = vector.load %arg1[%c48, %c0_5] : memref<56x128xf32, #tpu.memory_space<vmem>>, vector<1x64xf32>
    %c0_6 = arith.constant 0 : index
    %c0_7 = arith.constant 0 : index
    %5 = vector.load %arg2[%c0_6, %c0_7] : memref<688x16xf32, #tpu.memory_space<vmem>>, vector<16x16xf32>
    %6 = vector.extract_strided_slice %5 {offsets = [0, 0], sizes = [1, 16], strides = [1, 1]} : vector<16x16xf32> to vector<1x16xf32>
    %7 = vector.extract_strided_slice %5 {offsets = [1, 0], sizes = [1, 16], strides = [1, 1]} : vector<16x16xf32> to vector<1x16xf32>
    %8 = vector.extract_strided_slice %5 {offsets = [2, 0], sizes = [1, 16], strides = [1, 1]} : vector<16x16xf32> to vector<1x16xf32>
    %9 = vector.extract_strided_slice %5 {offsets = [3, 0], sizes = [1, 16], strides = [1, 1]} : vector<16x16xf32> to vector<1x16xf32>
    %10 = vector.extract_strided_slice %5 {offsets = [4, 0], sizes = [1, 16], strides = [1, 1]} : vector<16x16xf32> to vector<1x16xf32>
    %11 = vector.extract_strided_slice %5 {offsets = [5, 0], sizes = [1, 16], strides = [1, 1]} : vector<16x16xf32> to vector<1x16xf32>
    %12 = vector.extract_strided_slice %5 {offsets = [6, 0], sizes = [1, 16], strides = [1, 1]} : vector<16x16xf32> to vector<1x16xf32>
    %13 = vector.extract_strided_slice %5 {offsets = [7, 0], sizes = [1, 16], strides = [1, 1]} : vector<16x16xf32> to vector<1x16xf32>
    %14 = vector.extract_strided_slice %5 {offsets = [8, 0], sizes = [1, 16], strides = [1, 1]} : vector<16x16xf32> to vector<1x16xf32>
    %15 = vector.extract_strided_slice %5 {offsets = [9, 0], sizes = [1, 16], strides = [1, 1]} : vector<16x16xf32> to vector<1x16xf32>
    %16 = vector.extract_strided_slice %5 {offsets = [10, 0], sizes = [1, 16], strides = [1, 1]} : vector<16x16xf32> to vector<1x16xf32>
    %17 = vector.extract_strided_slice %5 {offsets = [11, 0], sizes = [1, 16], strides = [1, 1]} : vector<16x16xf32> to vector<1x16xf32>
    %18 = vector.extract_strided_slice %5 {offsets = [12, 0], sizes = [1, 16], strides = [1, 1]} : vector<16x16xf32> to vector<1x16xf32>
    %19 = vector.extract_strided_slice %5 {offsets = [13, 0], sizes = [1, 16], strides = [1, 1]} : vector<16x16xf32> to vector<1x16xf32>
    %20 = vector.extract_strided_slice %5 {offsets = [14, 0], sizes = [1, 16], strides = [1, 1]} : vector<16x16xf32> to vector<1x16xf32>
    %c16_8 = arith.constant 16 : index
    %c0_9 = arith.constant 0 : index
    %21 = vector.load %arg2[%c16_8, %c0_9] : memref<688x16xf32, #tpu.memory_space<vmem>>, vector<16x16xf32>
    %c32_10 = arith.constant 32 : index
    %c0_11 = arith.constant 0 : index
    %22 = vector.load %arg2[%c32_10, %c0_11] : memref<688x16xf32, #tpu.memory_space<vmem>>, vector<16x16xf32>
    %c48_12 = arith.constant 48 : index
    %c0_13 = arith.constant 0 : index
    %23 = vector.load %arg2[%c48_12, %c0_13] : memref<688x16xf32, #tpu.memory_space<vmem>>, vector<64x16xf32>
    %cst = arith.constant dense<0.000000e+00> : vector<32xf32>
    %24 = vector.multi_reduction <add>, %0, %cst [1] : vector<32x16xf32> to vector<32xf32>
    %25 = vector.shape_cast %24 : vector<32xf32> to vector<32x1xf32>
    %cst_14 = arith.constant 1.600000e+01 : f32
    %26 = vector.broadcast %cst_14 : f32 to vector<32x1xf32>
    %27 = arith.divf %25, %26 : vector<32x1xf32>
    %28 = vector.broadcast %27 : vector<32x1xf32> to vector<32x16xf32>
    %29 = arith.subf %0, %28 : vector<32x16xf32>
    %30 = arith.mulf %29, %29 : vector<32x16xf32>
    %cst_15 = arith.constant dense<0.000000e+00> : vector<32xf32>
    %31 = vector.multi_reduction <add>, %30, %cst_15 [1] : vector<32x16xf32> to vector<32xf32>
    %32 = vector.shape_cast %31 : vector<32xf32> to vector<32x1xf32>
    %cst_16 = arith.constant 1.600000e+01 : f32
    %33 = vector.broadcast %cst_16 : f32 to vector<32x1xf32>
    %34 = arith.divf %32, %33 : vector<32x1xf32>
    %35 = vector.broadcast %27 : vector<32x1xf32> to vector<32x16xf32>
    %36 = arith.subf %0, %35 : vector<32x16xf32>
    %cst_17 = arith.constant 9.99999974E-6 : f32
    %37 = vector.broadcast %cst_17 : f32 to vector<32x1xf32>
    %38 = arith.addf %34, %37 : vector<32x1xf32>
    %39 = math.rsqrt %38 : vector<32x1xf32>
    %40 = vector.broadcast %39 : vector<32x1xf32> to vector<32x16xf32>
    %41 = arith.mulf %36, %40 : vector<32x16xf32>
    %42 = vector.broadcast %6 : vector<1x16xf32> to vector<32x16xf32>
    %43 = arith.mulf %41, %42 : vector<32x16xf32>
    %44 = vector.broadcast %7 : vector<1x16xf32> to vector<32x16xf32>
    %45 = arith.addf %43, %44 : vector<32x16xf32>
    %cst_18 = arith.constant dense<0.000000e+00> : vector<32x48xf32>
    %46 = tpu.matmul %45, %1, %cst_18 {dimension_numbers = #tpu.dot_dimension_numbers<[1], [0], [0], [1], [0, 0, 1, 1], [], []>} : vector<32x16xf32>, vector<16x48xf32>, vector<32x48xf32> -> vector<32x48xf32>
    %47 = vector.extract_strided_slice %46 {offsets = [0, 0], sizes = [32, 16], strides = [1, 1]} : vector<32x48xf32> to vector<32x16xf32>
    %48 = vector.extract_strided_slice %46 {offsets = [0, 16], sizes = [32, 16], strides = [1, 1]} : vector<32x48xf32> to vector<32x16xf32>
    %49 = vector.extract_strided_slice %46 {offsets = [0, 32], sizes = [32, 16], strides = [1, 1]} : vector<32x48xf32> to vector<32x16xf32>
    %50 = vector.extract_strided_slice %47 {offsets = [0, 0], sizes = [16, 16], strides = [1, 1]} : vector<32x16xf32> to vector<16x16xf32>
    %51 = vector.extract_strided_slice %48 {offsets = [0, 0], sizes = [16, 16], strides = [1, 1]} : vector<32x16xf32> to vector<16x16xf32>
    %52 = vector.extract_strided_slice %49 {offsets = [0, 0], sizes = [16, 16], strides = [1, 1]} : vector<32x16xf32> to vector<16x16xf32>
    %53 = arith.mulf %50, %50 : vector<16x16xf32>
    %cst_19 = arith.constant dense<0.000000e+00> : vector<16xf32>
    %54 = vector.multi_reduction <add>, %53, %cst_19 [0] : vector<16x16xf32> to vector<16xf32>
    %55 = vector.shape_cast %54 : vector<16xf32> to vector<1x16xf32>
    %56 = math.sqrt %55 : vector<1x16xf32>
    %cst_20 = arith.constant 9.99999996E-13 : f32
    %57 = vector.broadcast %cst_20 : f32 to vector<1x16xf32>
    %58 = arith.maximumf %56, %57 : vector<1x16xf32>
    %59 = vector.broadcast %58 : vector<1x16xf32> to vector<16x16xf32>
    %60 = arith.divf %50, %59 : vector<16x16xf32>
    %61 = arith.mulf %51, %51 : vector<16x16xf32>
    %cst_21 = arith.constant dense<0.000000e+00> : vector<16xf32>
    %62 = vector.multi_reduction <add>, %61, %cst_21 [0] : vector<16x16xf32> to vector<16xf32>
    %63 = vector.shape_cast %62 : vector<16xf32> to vector<1x16xf32>
    %64 = math.sqrt %63 : vector<1x16xf32>
    %cst_22 = arith.constant 9.99999996E-13 : f32
    %65 = vector.broadcast %cst_22 : f32 to vector<1x16xf32>
    %66 = arith.maximumf %64, %65 : vector<1x16xf32>
    %67 = vector.broadcast %66 : vector<1x16xf32> to vector<16x16xf32>
    %68 = arith.divf %51, %67 : vector<16x16xf32>
    %cst_23 = arith.constant dense<0.000000e+00> : vector<16x16xf32>
    %69 = tpu.matmul %60, %68, %cst_23 {dimension_numbers = #tpu.dot_dimension_numbers<[0], [0], [1], [1], [0, 1, 1, 1], [], []>} : vector<16x16xf32>, vector<16x16xf32>, vector<16x16xf32> -> vector<16x16xf32>
    %70 = arith.mulf %69, %21 : vector<16x16xf32>
    %71 = arith.addf %70, %22 : vector<16x16xf32>
    %cst_24 = arith.constant dense<0xFF800000> : vector<16xf32>
    %72 = vector.multi_reduction <maximumf>, %71, %cst_24 [1] : vector<16x16xf32> to vector<16xf32>
    %73 = vector.shape_cast %72 : vector<16xf32> to vector<16x1xf32>
    %74 = vector.broadcast %73 : vector<16x1xf32> to vector<16x16xf32>
    %75 = arith.subf %71, %74 : vector<16x16xf32>
    %76 = math.exp %75 : vector<16x16xf32>
    %cst_25 = arith.constant dense<0.000000e+00> : vector<16xf32>
    %77 = vector.multi_reduction <add>, %76, %cst_25 [1] : vector<16x16xf32> to vector<16xf32>
    %78 = vector.shape_cast %77 : vector<16xf32> to vector<16x1xf32>
    %79 = vector.broadcast %78 : vector<16x1xf32> to vector<16x16xf32>
    %80 = arith.divf %76, %79 : vector<16x16xf32>
    %cst_26 = arith.constant dense<0.000000e+00> : vector<16x16xf32>
    %81 = tpu.matmul %52, %80, %cst_26 {dimension_numbers = #tpu.dot_dimension_numbers<[1], [1], [0], [0], [0, 0, 1, 0], [], []>} : vector<16x16xf32>, vector<16x16xf32>, vector<16x16xf32> -> vector<16x16xf32>
    %82 = vector.extract_strided_slice %47 {offsets = [16, 0], sizes = [16, 16], strides = [1, 1]} : vector<32x16xf32> to vector<16x16xf32>
    %83 = vector.extract_strided_slice %48 {offsets = [16, 0], sizes = [16, 16], strides = [1, 1]} : vector<32x16xf32> to vector<16x16xf32>
    %84 = vector.extract_strided_slice %49 {offsets = [16, 0], sizes = [16, 16], strides = [1, 1]} : vector<32x16xf32> to vector<16x16xf32>
    %85 = arith.mulf %82, %82 : vector<16x16xf32>
    %cst_27 = arith.constant dense<0.000000e+00> : vector<16xf32>
    %86 = vector.multi_reduction <add>, %85, %cst_27 [0] : vector<16x16xf32> to vector<16xf32>
    %87 = vector.shape_cast %86 : vector<16xf32> to vector<1x16xf32>
    %88 = math.sqrt %87 : vector<1x16xf32>
    %cst_28 = arith.constant 9.99999996E-13 : f32
    %89 = vector.broadcast %cst_28 : f32 to vector<1x16xf32>
    %90 = arith.maximumf %88, %89 : vector<1x16xf32>
    %91 = vector.broadcast %90 : vector<1x16xf32> to vector<16x16xf32>
    %92 = arith.divf %82, %91 : vector<16x16xf32>
    %93 = arith.mulf %83, %83 : vector<16x16xf32>
    %cst_29 = arith.constant dense<0.000000e+00> : vector<16xf32>
    %94 = vector.multi_reduction <add>, %93, %cst_29 [0] : vector<16x16xf32> to vector<16xf32>
    %95 = vector.shape_cast %94 : vector<16xf32> to vector<1x16xf32>
    %96 = math.sqrt %95 : vector<1x16xf32>
    %cst_30 = arith.constant 9.99999996E-13 : f32
    %97 = vector.broadcast %cst_30 : f32 to vector<1x16xf32>
    %98 = arith.maximumf %96, %97 : vector<1x16xf32>
    %99 = vector.broadcast %98 : vector<1x16xf32> to vector<16x16xf32>
    %100 = arith.divf %83, %99 : vector<16x16xf32>
    %cst_31 = arith.constant dense<0.000000e+00> : vector<16x16xf32>
    %101 = tpu.matmul %92, %100, %cst_31 {dimension_numbers = #tpu.dot_dimension_numbers<[0], [0], [1], [1], [0, 1, 1, 1], [], []>} : vector<16x16xf32>, vector<16x16xf32>, vector<16x16xf32> -> vector<16x16xf32>
    %102 = arith.mulf %101, %21 : vector<16x16xf32>
    %103 = arith.addf %102, %22 : vector<16x16xf32>
    %cst_32 = arith.constant dense<0xFF800000> : vector<16xf32>
    %104 = vector.multi_reduction <maximumf>, %103, %cst_32 [1] : vector<16x16xf32> to vector<16xf32>
    %105 = vector.shape_cast %104 : vector<16xf32> to vector<16x1xf32>
    %106 = vector.broadcast %105 : vector<16x1xf32> to vector<16x16xf32>
    %107 = arith.subf %103, %106 : vector<16x16xf32>
    %108 = math.exp %107 : vector<16x16xf32>
    %cst_33 = arith.constant dense<0.000000e+00> : vector<16xf32>
    %109 = vector.multi_reduction <add>, %108, %cst_33 [1] : vector<16x16xf32> to vector<16xf32>
    %110 = vector.shape_cast %109 : vector<16xf32> to vector<16x1xf32>
    %111 = vector.broadcast %110 : vector<16x1xf32> to vector<16x16xf32>
    %112 = arith.divf %108, %111 : vector<16x16xf32>
    %cst_34 = arith.constant dense<0.000000e+00> : vector<16x16xf32>
    %113 = tpu.matmul %84, %112, %cst_34 {dimension_numbers = #tpu.dot_dimension_numbers<[1], [1], [0], [0], [0, 0, 1, 0], [], []>} : vector<16x16xf32>, vector<16x16xf32>, vector<16x16xf32> -> vector<16x16xf32>
    %114 = tpu.concatenate %81, %113 in 0 : vector<16x16xf32>, vector<16x16xf32> -> vector<32x16xf32>
    %cst_35 = arith.constant dense<0.000000e+00> : vector<32x16xf32>
    %115 = tpu.matmul %114, %2, %cst_35 {dimension_numbers = #tpu.dot_dimension_numbers<[1], [0], [0], [1], [0, 0, 1, 1], [], []>} : vector<32x16xf32>, vector<16x16xf32>, vector<32x16xf32> -> vector<32x16xf32>
    %116 = vector.broadcast %8 : vector<1x16xf32> to vector<32x16xf32>
    %117 = arith.addf %115, %116 : vector<32x16xf32>
    %118 = vector.broadcast %9 : vector<1x16xf32> to vector<32x16xf32>
    %119 = arith.mulf %118, %117 : vector<32x16xf32>
    %120 = arith.addf %0, %119 : vector<32x16xf32>
    %cst_36 = arith.constant dense<0.000000e+00> : vector<32xf32>
    %121 = vector.multi_reduction <add>, %120, %cst_36 [1] : vector<32x16xf32> to vector<32xf32>
    %122 = vector.shape_cast %121 : vector<32xf32> to vector<32x1xf32>
    %cst_37 = arith.constant 1.600000e+01 : f32
    %123 = vector.broadcast %cst_37 : f32 to vector<32x1xf32>
    %124 = arith.divf %122, %123 : vector<32x1xf32>
    %125 = vector.broadcast %124 : vector<32x1xf32> to vector<32x16xf32>
    %126 = arith.subf %120, %125 : vector<32x16xf32>
    %127 = arith.mulf %126, %126 : vector<32x16xf32>
    %cst_38 = arith.constant dense<0.000000e+00> : vector<32xf32>
    %128 = vector.multi_reduction <add>, %127, %cst_38 [1] : vector<32x16xf32> to vector<32xf32>
    %129 = vector.shape_cast %128 : vector<32xf32> to vector<32x1xf32>
    %cst_39 = arith.constant 1.600000e+01 : f32
    %130 = vector.broadcast %cst_39 : f32 to vector<32x1xf32>
    %131 = arith.divf %129, %130 : vector<32x1xf32>
    %132 = vector.broadcast %124 : vector<32x1xf32> to vector<32x16xf32>
    %133 = arith.subf %120, %132 : vector<32x16xf32>
    %cst_40 = arith.constant 9.99999974E-6 : f32
    %134 = vector.broadcast %cst_40 : f32 to vector<32x1xf32>
    %135 = arith.addf %131, %134 : vector<32x1xf32>
    %136 = math.rsqrt %135 : vector<32x1xf32>
    %137 = vector.broadcast %136 : vector<32x1xf32> to vector<32x16xf32>
    %138 = arith.mulf %133, %137 : vector<32x16xf32>
    %139 = vector.broadcast %10 : vector<1x16xf32> to vector<32x16xf32>
    %140 = arith.mulf %138, %139 : vector<32x16xf32>
    %141 = vector.broadcast %11 : vector<1x16xf32> to vector<32x16xf32>
    %142 = arith.addf %140, %141 : vector<32x16xf32>
    %cst_41 = arith.constant 0.000000e+00 : f32
    %143 = vector.broadcast %cst_41 : f32 to vector<32x16xf32>
    %144 = vector.extract_strided_slice %142 {offsets = [27, 0], sizes = [5, 16], strides = [1, 1]} : vector<32x16xf32> to vector<5x16xf32>
    %145 = vector.extract_strided_slice %142 {offsets = [0, 0], sizes = [27, 16], strides = [1, 1]} : vector<32x16xf32> to vector<27x16xf32>
    %146 = tpu.concatenate %144, %145 in 0 : vector<5x16xf32>, vector<27x16xf32> -> vector<32x16xf32>
    %c112 = arith.constant 112 : index
    %c0_42 = arith.constant 0 : index
    %147 = vector.load %arg2[%c112, %c0_42] : memref<688x16xf32, #tpu.memory_space<vmem>>, vector<32x16xf32>
    %148 = arith.mulf %146, %147 : vector<32x16xf32>
    %149 = arith.addf %143, %148 : vector<32x16xf32>
    %150 = vector.extract_strided_slice %142 {offsets = [28, 0], sizes = [4, 16], strides = [1, 1]} : vector<32x16xf32> to vector<4x16xf32>
    %151 = vector.extract_strided_slice %142 {offsets = [0, 0], sizes = [28, 16], strides = [1, 1]} : vector<32x16xf32> to vector<28x16xf32>
    %152 = tpu.concatenate %150, %151 in 0 : vector<4x16xf32>, vector<28x16xf32> -> vector<32x16xf32>
    %c144 = arith.constant 144 : index
    %c0_43 = arith.constant 0 : index
    %153 = vector.load %arg2[%c144, %c0_43] : memref<688x16xf32, #tpu.memory_space<vmem>>, vector<32x16xf32>
    %154 = arith.mulf %152, %153 : vector<32x16xf32>
    %155 = arith.addf %149, %154 : vector<32x16xf32>
    %156 = vector.extract_strided_slice %142 {offsets = [29, 0], sizes = [3, 16], strides = [1, 1]} : vector<32x16xf32> to vector<3x16xf32>
    %157 = vector.extract_strided_slice %142 {offsets = [0, 0], sizes = [29, 16], strides = [1, 1]} : vector<32x16xf32> to vector<29x16xf32>
    %158 = tpu.concatenate %156, %157 in 0 : vector<3x16xf32>, vector<29x16xf32> -> vector<32x16xf32>
    %c176 = arith.constant 176 : index
    %c0_44 = arith.constant 0 : index
    %159 = vector.load %arg2[%c176, %c0_44] : memref<688x16xf32, #tpu.memory_space<vmem>>, vector<32x16xf32>
    %160 = arith.mulf %158, %159 : vector<32x16xf32>
    %161 = arith.addf %155, %160 : vector<32x16xf32>
    %162 = vector.extract_strided_slice %142 {offsets = [31, 0], sizes = [1, 16], strides = [1, 1]} : vector<32x16xf32> to vector<1x16xf32>
    %163 = vector.extract_strided_slice %142 {offsets = [0, 0], sizes = [31, 16], strides = [1, 1]} : vector<32x16xf32> to vector<31x16xf32>
    %164 = tpu.concatenate %162, %163 in 0 : vector<1x16xf32>, vector<31x16xf32> -> vector<32x16xf32>
    %c208 = arith.constant 208 : index
    %c0_45 = arith.constant 0 : index
    %165 = vector.load %arg2[%c208, %c0_45] : memref<688x16xf32, #tpu.memory_space<vmem>>, vector<32x16xf32>
    %166 = arith.mulf %164, %165 : vector<32x16xf32>
    %167 = arith.addf %161, %166 : vector<32x16xf32>
    %c240 = arith.constant 240 : index
    %c0_46 = arith.constant 0 : index
    %168 = vector.load %arg2[%c240, %c0_46] : memref<688x16xf32, #tpu.memory_space<vmem>>, vector<32x16xf32>
    %169 = arith.mulf %142, %168 : vector<32x16xf32>
    %170 = arith.addf %167, %169 : vector<32x16xf32>
    %171 = vector.extract_strided_slice %142 {offsets = [1, 0], sizes = [31, 16], strides = [1, 1]} : vector<32x16xf32> to vector<31x16xf32>
    %172 = vector.extract_strided_slice %142 {offsets = [0, 0], sizes = [1, 16], strides = [1, 1]} : vector<32x16xf32> to vector<1x16xf32>
    %173 = tpu.concatenate %171, %172 in 0 : vector<31x16xf32>, vector<1x16xf32> -> vector<32x16xf32>
    %c272 = arith.constant 272 : index
    %c0_47 = arith.constant 0 : index
    %174 = vector.load %arg2[%c272, %c0_47] : memref<688x16xf32, #tpu.memory_space<vmem>>, vector<32x16xf32>
    %175 = arith.mulf %173, %174 : vector<32x16xf32>
    %176 = arith.addf %170, %175 : vector<32x16xf32>
    %177 = vector.extract_strided_slice %142 {offsets = [3, 0], sizes = [29, 16], strides = [1, 1]} : vector<32x16xf32> to vector<29x16xf32>
    %178 = vector.extract_strided_slice %142 {offsets = [0, 0], sizes = [3, 16], strides = [1, 1]} : vector<32x16xf32> to vector<3x16xf32>
    %179 = tpu.concatenate %177, %178 in 0 : vector<29x16xf32>, vector<3x16xf32> -> vector<32x16xf32>
    %c304 = arith.constant 304 : index
    %c0_48 = arith.constant 0 : index
    %180 = vector.load %arg2[%c304, %c0_48] : memref<688x16xf32, #tpu.memory_space<vmem>>, vector<32x16xf32>
    %181 = arith.mulf %179, %180 : vector<32x16xf32>
    %182 = arith.addf %176, %181 : vector<32x16xf32>
    %183 = vector.extract_strided_slice %142 {offsets = [4, 0], sizes = [28, 16], strides = [1, 1]} : vector<32x16xf32> to vector<28x16xf32>
    %184 = vector.extract_strided_slice %142 {offsets = [0, 0], sizes = [4, 16], strides = [1, 1]} : vector<32x16xf32> to vector<4x16xf32>
    %185 = tpu.concatenate %183, %184 in 0 : vector<28x16xf32>, vector<4x16xf32> -> vector<32x16xf32>
    %c336 = arith.constant 336 : index
    %c0_49 = arith.constant 0 : index
    %186 = vector.load %arg2[%c336, %c0_49] : memref<688x16xf32, #tpu.memory_space<vmem>>, vector<32x16xf32>
    %187 = arith.mulf %185, %186 : vector<32x16xf32>
    %188 = arith.addf %182, %187 : vector<32x16xf32>
    %189 = vector.extract_strided_slice %142 {offsets = [5, 0], sizes = [27, 16], strides = [1, 1]} : vector<32x16xf32> to vector<27x16xf32>
    %190 = vector.extract_strided_slice %142 {offsets = [0, 0], sizes = [5, 16], strides = [1, 1]} : vector<32x16xf32> to vector<5x16xf32>
    %191 = tpu.concatenate %189, %190 in 0 : vector<27x16xf32>, vector<5x16xf32> -> vector<32x16xf32>
    %c368 = arith.constant 368 : index
    %c0_50 = arith.constant 0 : index
    %192 = vector.load %arg2[%c368, %c0_50] : memref<688x16xf32, #tpu.memory_space<vmem>>, vector<32x16xf32>
    %193 = arith.mulf %191, %192 : vector<32x16xf32>
    %194 = arith.addf %188, %193 : vector<32x16xf32>
    %195 = vector.broadcast %12 : vector<1x16xf32> to vector<32x16xf32>
    %196 = arith.addf %194, %195 : vector<32x16xf32>
    %cst_51 = arith.constant 5.000000e-01 : f32
    %197 = vector.broadcast %cst_51 : f32 to vector<32x16xf32>
    %198 = arith.mulf %197, %196 : vector<32x16xf32>
    %cst_52 = arith.constant 0.707106769 : f32
    %199 = vector.broadcast %cst_52 : f32 to vector<32x16xf32>
    %200 = arith.mulf %196, %199 : vector<32x16xf32>
    %cst_53 = arith.constant 0.000000e+00 : f32
    %201 = vector.broadcast %cst_53 : f32 to vector<32x16xf32>
    %202 = arith.cmpf oge, %200, %201 : vector<32x16xf32>
    %cst_54 = arith.constant 1.000000e+00 : f32
    %cst_55 = arith.constant -1.000000e+00 : f32
    %203 = vector.broadcast %cst_54 : f32 to vector<32x16xf32>
    %204 = vector.broadcast %cst_55 : f32 to vector<32x16xf32>
    %205 = arith.select %202, %203, %204 : vector<32x16xi1>, vector<32x16xf32>
    %206 = math.absf %200 : vector<32x16xf32>
    %cst_56 = arith.constant 0.327591091 : f32
    %207 = vector.broadcast %cst_56 : f32 to vector<32x16xf32>
    %208 = arith.mulf %207, %206 : vector<32x16xf32>
    %cst_57 = arith.constant 1.000000e+00 : f32
    %209 = vector.broadcast %cst_57 : f32 to vector<32x16xf32>
    %210 = arith.addf %209, %208 : vector<32x16xf32>
    %cst_58 = arith.constant 1.000000e+00 : f32
    %211 = vector.broadcast %cst_58 : f32 to vector<32x16xf32>
    %212 = arith.divf %211, %210 : vector<32x16xf32>
    %cst_59 = arith.constant 1.06140542 : f32
    %213 = vector.broadcast %cst_59 : f32 to vector<32x16xf32>
    %214 = arith.mulf %213, %212 : vector<32x16xf32>
    %cst_60 = arith.constant -1.45315206 : f32
    %215 = vector.broadcast %cst_60 : f32 to vector<32x16xf32>
    %216 = arith.addf %214, %215 : vector<32x16xf32>
    %217 = arith.mulf %216, %212 : vector<32x16xf32>
    %cst_61 = arith.constant 1.42141378 : f32
    %218 = vector.broadcast %cst_61 : f32 to vector<32x16xf32>
    %219 = arith.addf %217, %218 : vector<32x16xf32>
    %220 = arith.mulf %219, %212 : vector<32x16xf32>
    %cst_62 = arith.constant -0.284496725 : f32
    %221 = vector.broadcast %cst_62 : f32 to vector<32x16xf32>
    %222 = arith.addf %220, %221 : vector<32x16xf32>
    %223 = arith.mulf %222, %212 : vector<32x16xf32>
    %cst_63 = arith.constant 0.254829586 : f32
    %224 = vector.broadcast %cst_63 : f32 to vector<32x16xf32>
    %225 = arith.addf %223, %224 : vector<32x16xf32>
    %226 = arith.mulf %225, %212 : vector<32x16xf32>
    %cst_64 = arith.constant 0.000000e+00 : f32
    %227 = vector.broadcast %cst_64 : f32 to vector<32x16xf32>
    %228 = arith.subf %227, %206 : vector<32x16xf32>
    %229 = arith.mulf %228, %206 : vector<32x16xf32>
    %230 = math.exp %229 : vector<32x16xf32>
    %231 = arith.mulf %226, %230 : vector<32x16xf32>
    %cst_65 = arith.constant 1.000000e+00 : f32
    %232 = vector.broadcast %cst_65 : f32 to vector<32x16xf32>
    %233 = arith.subf %232, %231 : vector<32x16xf32>
    %234 = arith.mulf %205, %233 : vector<32x16xf32>
    %cst_66 = arith.constant 1.000000e+00 : f32
    %235 = vector.broadcast %cst_66 : f32 to vector<32x16xf32>
    %236 = arith.addf %235, %234 : vector<32x16xf32>
    %237 = arith.mulf %198, %236 : vector<32x16xf32>
    %238 = vector.broadcast %13 : vector<1x16xf32> to vector<32x16xf32>
    %239 = arith.mulf %237, %238 : vector<32x16xf32>
    %240 = vector.broadcast %14 : vector<1x16xf32> to vector<32x16xf32>
    %241 = arith.addf %239, %240 : vector<32x16xf32>
    %cst_67 = arith.constant 0.000000e+00 : f32
    %242 = vector.broadcast %cst_67 : f32 to vector<32x16xf32>
    %243 = vector.extract_strided_slice %241 {offsets = [27, 0], sizes = [5, 16], strides = [1, 1]} : vector<32x16xf32> to vector<5x16xf32>
    %244 = vector.extract_strided_slice %241 {offsets = [0, 0], sizes = [27, 16], strides = [1, 1]} : vector<32x16xf32> to vector<27x16xf32>
    %245 = tpu.concatenate %243, %244 in 0 : vector<5x16xf32>, vector<27x16xf32> -> vector<32x16xf32>
    %c400 = arith.constant 400 : index
    %c0_68 = arith.constant 0 : index
    %246 = vector.load %arg2[%c400, %c0_68] : memref<688x16xf32, #tpu.memory_space<vmem>>, vector<32x16xf32>
    %247 = arith.mulf %245, %246 : vector<32x16xf32>
    %248 = arith.addf %242, %247 : vector<32x16xf32>
    %249 = vector.extract_strided_slice %241 {offsets = [28, 0], sizes = [4, 16], strides = [1, 1]} : vector<32x16xf32> to vector<4x16xf32>
    %250 = vector.extract_strided_slice %241 {offsets = [0, 0], sizes = [28, 16], strides = [1, 1]} : vector<32x16xf32> to vector<28x16xf32>
    %251 = tpu.concatenate %249, %250 in 0 : vector<4x16xf32>, vector<28x16xf32> -> vector<32x16xf32>
    %c432 = arith.constant 432 : index
    %c0_69 = arith.constant 0 : index
    %252 = vector.load %arg2[%c432, %c0_69] : memref<688x16xf32, #tpu.memory_space<vmem>>, vector<32x16xf32>
    %253 = arith.mulf %251, %252 : vector<32x16xf32>
    %254 = arith.addf %248, %253 : vector<32x16xf32>
    %255 = vector.extract_strided_slice %241 {offsets = [29, 0], sizes = [3, 16], strides = [1, 1]} : vector<32x16xf32> to vector<3x16xf32>
    %256 = vector.extract_strided_slice %241 {offsets = [0, 0], sizes = [29, 16], strides = [1, 1]} : vector<32x16xf32> to vector<29x16xf32>
    %257 = tpu.concatenate %255, %256 in 0 : vector<3x16xf32>, vector<29x16xf32> -> vector<32x16xf32>
    %c464 = arith.constant 464 : index
    %c0_70 = arith.constant 0 : index
    %258 = vector.load %arg2[%c464, %c0_70] : memref<688x16xf32, #tpu.memory_space<vmem>>, vector<32x16xf32>
    %259 = arith.mulf %257, %258 : vector<32x16xf32>
    %260 = arith.addf %254, %259 : vector<32x16xf32>
    %261 = vector.extract_strided_slice %241 {offsets = [31, 0], sizes = [1, 16], strides = [1, 1]} : vector<32x16xf32> to vector<1x16xf32>
    %262 = vector.extract_strided_slice %241 {offsets = [0, 0], sizes = [31, 16], strides = [1, 1]} : vector<32x16xf32> to vector<31x16xf32>
    %263 = tpu.concatenate %261, %262 in 0 : vector<1x16xf32>, vector<31x16xf32> -> vector<32x16xf32>
    %c496 = arith.constant 496 : index
    %c0_71 = arith.constant 0 : index
    %264 = vector.load %arg2[%c496, %c0_71] : memref<688x16xf32, #tpu.memory_space<vmem>>, vector<32x16xf32>
    %265 = arith.mulf %263, %264 : vector<32x16xf32>
    %266 = arith.addf %260, %265 : vector<32x16xf32>
    %c528 = arith.constant 528 : index
    %c0_72 = arith.constant 0 : index
    %267 = vector.load %arg2[%c528, %c0_72] : memref<688x16xf32, #tpu.memory_space<vmem>>, vector<32x16xf32>
    %268 = arith.mulf %241, %267 : vector<32x16xf32>
    %269 = arith.addf %266, %268 : vector<32x16xf32>
    %270 = vector.extract_strided_slice %241 {offsets = [1, 0], sizes = [31, 16], strides = [1, 1]} : vector<32x16xf32> to vector<31x16xf32>
    %271 = vector.extract_strided_slice %241 {offsets = [0, 0], sizes = [1, 16], strides = [1, 1]} : vector<32x16xf32> to vector<1x16xf32>
    %272 = tpu.concatenate %270, %271 in 0 : vector<31x16xf32>, vector<1x16xf32> -> vector<32x16xf32>
    %c560 = arith.constant 560 : index
    %c0_73 = arith.constant 0 : index
    %273 = vector.load %arg2[%c560, %c0_73] : memref<688x16xf32, #tpu.memory_space<vmem>>, vector<32x16xf32>
    %274 = arith.mulf %272, %273 : vector<32x16xf32>
    %275 = arith.addf %269, %274 : vector<32x16xf32>
    %276 = vector.extract_strided_slice %241 {offsets = [3, 0], sizes = [29, 16], strides = [1, 1]} : vector<32x16xf32> to vector<29x16xf32>
    %277 = vector.extract_strided_slice %241 {offsets = [0, 0], sizes = [3, 16], strides = [1, 1]} : vector<32x16xf32> to vector<3x16xf32>
    %278 = tpu.concatenate %276, %277 in 0 : vector<29x16xf32>, vector<3x16xf32> -> vector<32x16xf32>
    %c592 = arith.constant 592 : index
    %c0_74 = arith.constant 0 : index
    %279 = vector.load %arg2[%c592, %c0_74] : memref<688x16xf32, #tpu.memory_space<vmem>>, vector<32x16xf32>
    %280 = arith.mulf %278, %279 : vector<32x16xf32>
    %281 = arith.addf %275, %280 : vector<32x16xf32>
    %282 = vector.extract_strided_slice %241 {offsets = [4, 0], sizes = [28, 16], strides = [1, 1]} : vector<32x16xf32> to vector<28x16xf32>
    %283 = vector.extract_strided_slice %241 {offsets = [0, 0], sizes = [4, 16], strides = [1, 1]} : vector<32x16xf32> to vector<4x16xf32>
    %284 = tpu.concatenate %282, %283 in 0 : vector<28x16xf32>, vector<4x16xf32> -> vector<32x16xf32>
    %c624 = arith.constant 624 : index
    %c0_75 = arith.constant 0 : index
    %285 = vector.load %arg2[%c624, %c0_75] : memref<688x16xf32, #tpu.memory_space<vmem>>, vector<32x16xf32>
    %286 = arith.mulf %284, %285 : vector<32x16xf32>
    %287 = arith.addf %281, %286 : vector<32x16xf32>
    %288 = vector.extract_strided_slice %241 {offsets = [5, 0], sizes = [27, 16], strides = [1, 1]} : vector<32x16xf32> to vector<27x16xf32>
    %289 = vector.extract_strided_slice %241 {offsets = [0, 0], sizes = [5, 16], strides = [1, 1]} : vector<32x16xf32> to vector<5x16xf32>
    %290 = tpu.concatenate %288, %289 in 0 : vector<27x16xf32>, vector<5x16xf32> -> vector<32x16xf32>
    %c656 = arith.constant 656 : index
    %c0_76 = arith.constant 0 : index
    %291 = vector.load %arg2[%c656, %c0_76] : memref<688x16xf32, #tpu.memory_space<vmem>>, vector<32x16xf32>
    %292 = arith.mulf %290, %291 : vector<32x16xf32>
    %293 = arith.addf %287, %292 : vector<32x16xf32>
    %294 = vector.broadcast %15 : vector<1x16xf32> to vector<32x16xf32>
    %295 = arith.addf %293, %294 : vector<32x16xf32>
    %296 = vector.broadcast %16 : vector<1x16xf32> to vector<32x16xf32>
    %297 = arith.mulf %296, %295 : vector<32x16xf32>
    %298 = arith.addf %120, %297 : vector<32x16xf32>
    %cst_77 = arith.constant dense<0.000000e+00> : vector<32xf32>
    %299 = vector.multi_reduction <add>, %298, %cst_77 [1] : vector<32x16xf32> to vector<32xf32>
    %300 = vector.shape_cast %299 : vector<32xf32> to vector<32x1xf32>
    %cst_78 = arith.constant 1.600000e+01 : f32
    %301 = vector.broadcast %cst_78 : f32 to vector<32x1xf32>
    %302 = arith.divf %300, %301 : vector<32x1xf32>
    %303 = vector.broadcast %302 : vector<32x1xf32> to vector<32x16xf32>
    %304 = arith.subf %298, %303 : vector<32x16xf32>
    %305 = arith.mulf %304, %304 : vector<32x16xf32>
    %cst_79 = arith.constant dense<0.000000e+00> : vector<32xf32>
    %306 = vector.multi_reduction <add>, %305, %cst_79 [1] : vector<32x16xf32> to vector<32xf32>
    %307 = vector.shape_cast %306 : vector<32xf32> to vector<32x1xf32>
    %cst_80 = arith.constant 1.600000e+01 : f32
    %308 = vector.broadcast %cst_80 : f32 to vector<32x1xf32>
    %309 = arith.divf %307, %308 : vector<32x1xf32>
    %310 = vector.broadcast %302 : vector<32x1xf32> to vector<32x16xf32>
    %311 = arith.subf %298, %310 : vector<32x16xf32>
    %cst_81 = arith.constant 9.99999974E-6 : f32
    %312 = vector.broadcast %cst_81 : f32 to vector<32x1xf32>
    %313 = arith.addf %309, %312 : vector<32x1xf32>
    %314 = math.rsqrt %313 : vector<32x1xf32>
    %315 = vector.broadcast %314 : vector<32x1xf32> to vector<32x16xf32>
    %316 = arith.mulf %311, %315 : vector<32x16xf32>
    %317 = vector.broadcast %17 : vector<1x16xf32> to vector<32x16xf32>
    %318 = arith.mulf %316, %317 : vector<32x16xf32>
    %319 = vector.broadcast %18 : vector<1x16xf32> to vector<32x16xf32>
    %320 = arith.addf %318, %319 : vector<32x16xf32>
    %cst_82 = arith.constant dense<0.000000e+00> : vector<32x64xf32>
    %321 = tpu.matmul %320, %3, %cst_82 {dimension_numbers = #tpu.dot_dimension_numbers<[1], [0], [0], [1], [0, 0, 1, 1], [], []>} : vector<32x16xf32>, vector<16x64xf32>, vector<32x64xf32> -> vector<32x64xf32>
    %322 = vector.broadcast %4 : vector<1x64xf32> to vector<32x64xf32>
    %323 = arith.addf %321, %322 : vector<32x64xf32>
    %cst_83 = arith.constant 5.000000e-01 : f32
    %324 = vector.broadcast %cst_83 : f32 to vector<32x64xf32>
    %325 = arith.mulf %324, %323 : vector<32x64xf32>
    %cst_84 = arith.constant 0.707106769 : f32
    %326 = vector.broadcast %cst_84 : f32 to vector<32x64xf32>
    %327 = arith.mulf %323, %326 : vector<32x64xf32>
    %cst_85 = arith.constant 0.000000e+00 : f32
    %328 = vector.broadcast %cst_85 : f32 to vector<32x64xf32>
    %329 = arith.cmpf oge, %327, %328 : vector<32x64xf32>
    %cst_86 = arith.constant 1.000000e+00 : f32
    %cst_87 = arith.constant -1.000000e+00 : f32
    %330 = vector.broadcast %cst_86 : f32 to vector<32x64xf32>
    %331 = vector.broadcast %cst_87 : f32 to vector<32x64xf32>
    %332 = arith.select %329, %330, %331 : vector<32x64xi1>, vector<32x64xf32>
    %333 = math.absf %327 : vector<32x64xf32>
    %cst_88 = arith.constant 0.327591091 : f32
    %334 = vector.broadcast %cst_88 : f32 to vector<32x64xf32>
    %335 = arith.mulf %334, %333 : vector<32x64xf32>
    %cst_89 = arith.constant 1.000000e+00 : f32
    %336 = vector.broadcast %cst_89 : f32 to vector<32x64xf32>
    %337 = arith.addf %336, %335 : vector<32x64xf32>
    %cst_90 = arith.constant 1.000000e+00 : f32
    %338 = vector.broadcast %cst_90 : f32 to vector<32x64xf32>
    %339 = arith.divf %338, %337 : vector<32x64xf32>
    %cst_91 = arith.constant 1.06140542 : f32
    %340 = vector.broadcast %cst_91 : f32 to vector<32x64xf32>
    %341 = arith.mulf %340, %339 : vector<32x64xf32>
    %cst_92 = arith.constant -1.45315206 : f32
    %342 = vector.broadcast %cst_92 : f32 to vector<32x64xf32>
    %343 = arith.addf %341, %342 : vector<32x64xf32>
    %344 = arith.mulf %343, %339 : vector<32x64xf32>
    %cst_93 = arith.constant 1.42141378 : f32
    %345 = vector.broadcast %cst_93 : f32 to vector<32x64xf32>
    %346 = arith.addf %344, %345 : vector<32x64xf32>
    %347 = arith.mulf %346, %339 : vector<32x64xf32>
    %cst_94 = arith.constant -0.284496725 : f32
    %348 = vector.broadcast %cst_94 : f32 to vector<32x64xf32>
    %349 = arith.addf %347, %348 : vector<32x64xf32>
    %350 = arith.mulf %349, %339 : vector<32x64xf32>
    %cst_95 = arith.constant 0.254829586 : f32
    %351 = vector.broadcast %cst_95 : f32 to vector<32x64xf32>
    %352 = arith.addf %350, %351 : vector<32x64xf32>
    %353 = arith.mulf %352, %339 : vector<32x64xf32>
    %cst_96 = arith.constant 0.000000e+00 : f32
    %354 = vector.broadcast %cst_96 : f32 to vector<32x64xf32>
    %355 = arith.subf %354, %333 : vector<32x64xf32>
    %356 = arith.mulf %355, %333 : vector<32x64xf32>
    %357 = math.exp %356 : vector<32x64xf32>
    %358 = arith.mulf %353, %357 : vector<32x64xf32>
    %cst_97 = arith.constant 1.000000e+00 : f32
    %359 = vector.broadcast %cst_97 : f32 to vector<32x64xf32>
    %360 = arith.subf %359, %358 : vector<32x64xf32>
    %361 = arith.mulf %332, %360 : vector<32x64xf32>
    %cst_98 = arith.constant 1.000000e+00 : f32
    %362 = vector.broadcast %cst_98 : f32 to vector<32x64xf32>
    %363 = arith.addf %362, %361 : vector<32x64xf32>
    %364 = arith.mulf %325, %363 : vector<32x64xf32>
    %cst_99 = arith.constant dense<0.000000e+00> : vector<32x16xf32>
    %365 = tpu.matmul %364, %23, %cst_99 {dimension_numbers = #tpu.dot_dimension_numbers<[1], [0], [0], [1], [0, 0, 1, 1], [], []>} : vector<32x64xf32>, vector<64x16xf32>, vector<32x16xf32> -> vector<32x16xf32>
    %366 = vector.broadcast %19 : vector<1x16xf32> to vector<32x16xf32>
    %367 = arith.addf %365, %366 : vector<32x16xf32>
    %368 = vector.broadcast %20 : vector<1x16xf32> to vector<32x16xf32>
    %369 = arith.mulf %368, %367 : vector<32x16xf32>
    %370 = arith.addf %298, %369 : vector<32x16xf32>
    %c0_100 = arith.constant 0 : index
    %c0_101 = arith.constant 0 : index
    %371 = vector.load %arg3[%c0_100, %c0_101] : memref<32x16xf32, #tpu.memory_space<vmem>>, vector<32x16xf32>
    tpu.vector_store %arg3[%c0_100, %c0_101], %370 {strides = array<i32>} : memref<32x16xf32, #tpu.memory_space<vmem>>, vector<32x16xf32>,
    return
  }
}

</mosaic_0001>

<bundles_post_ra>
// kernel: tpu_custom_call.1
= control target key start
LH: loop header
LB: loop body
LE: loop exit
PB: predicated region body
PF: predicated region fallthrough
CT: control target
= control target key end

     0   :  { %vm39_vm0 = vcmask 130048   ;;  %v1857_v8 = vmov 16.0   ;;  %vm226_vm14 = vcmask 261248   ;;  %s1858_s25 = smov 112   ;;  %s1859_s7 = smov 96   ;;  %s2832_s0 = inlined_call_operand.vmem [shape: f32[32,16], index: 0, kind: input, shape index: {}]   ;;  %s2833_s1 = inlined_call_operand.vmem [shape: f32[56,128], index: 1, kind: input, shape index: {}]   ;;  %s2834_s2 = inlined_call_operand.vmem [shape: f32[688,16], index: 2, kind: input, shape index: {}]   ;;  %s2835_s3 = inlined_call_operand.vmem [shape: f32[32,16], index: 3, kind: output, shape index: {}]  }
   0x1   :  { %v1884_v0 = vld [vmem:[%s2832_s0 + $0x10] sm:$0xff]  ;;  %v1889_v1 = vld [vmem:[%s2832_s0] sm:$0xff]  ;;  %v1898_v4 = vld [vmem:[%s2832_s0 + $0x18] sm:$0xff]  ;;  %1766 = vrcp.f32 %v1857_v8 }
   0x2   :  { %v46_v2 = vsel %vm39_vm0, %v1884_v0, 0.0  ;;  %v40_v3 = vsel %vm39_vm0, %v1889_v1, 0.0  ;;  %v1903_v5 = vld [vmem:[%s2832_s0 + $0x8] sm:$0xff]  ;;  %v49_v6 = vsel %vm39_vm0, %v1898_v4, 0.0  ;;  %v18_v36 = vld [vmem:[%s2833_s1] sm:$0xff] }
   0x3   :  { %47 = vadd.xlane.f32.xlu1 %v46_v2  ;;  %41 = vadd.xlane.f32.xlu0 %v40_v3  ;;  %v43_v7 = vsel %vm39_vm0, %v1903_v5, 0.0  ;;  %v19_v35 = vld [vmem:[%s2833_s1 + $0x8] sm:$0xff]  ;;  %v1952_v58 = vld [vmem:[%s2834_s2] sm:$0xff] }
   0x4   :  { %171 = vmatpush.msra.mxu0 %v19_v35  ;;  %1748 = vmatpush.msra.mxu1 %v19_v35 }
   0x6   :  { %172 = vmatpush.msra.mxu0 %v18_v36  ;;  %1749 = vmatpush.msra.mxu1 %v18_v36 }
   0x7   :  { %v1767_v9 = vpop.eup %1766 }
   0x8   :  { %v53_v10 = vmul.f32 16.0, %v1767_v9  ;;  %vm57_vm1 = vweird.f32 %v1767_v9 }
   0xa   :  { %v54_v11 = vsub.f32 1.0, %v53_v10 }
   0xb   :  { %50 = vadd.xlane.f32.xlu1 %v49_v6  ;;  %44 = vadd.xlane.f32.xlu0 %v43_v7  ;;  %v135_v6 = vperm.slane %v1952_v58, 0 }
   0xc   :  { %v55_v12 = vmul.f32 %v1767_v9, %v54_v11 }
   0xe   :  { %v56_v13 = vadd.f32 %v1767_v9, %v55_v12  ;;  %v140_v12 = vperm.slane %v1952_v58, 1 }
  0x10   :  { %v1909_v14 = vsel %vm57_vm1, %v1767_v9, %v56_v13 }
  0x76   :  { %v48_v15 = vpop.xlane.xlu1 %47  ;;  %v42_v16 = vpop.xlane.xlu0 %41 }
  0x77   :  { %v61_v17 = vmul.f32 %v1909_v14, %v48_v15  ;;  %v59_v18 = vmul.f32 %v1909_v14, %v42_v16 }
  0x79   :  { %v1914_v19 = vsub.f32 %v1884_v0, %v61_v17  ;;  %v1917_v20 = vsub.f32 %v1889_v1, %v59_v18 }
  0x7b   :  { %v69_v21 = vmul.f32 %v1914_v19, %v1914_v19  ;;  %v67_v22 = vmul.f32 %v1917_v20, %v1917_v20 }
  0x7d   :  { %v77_v23 = vsel %vm39_vm0, %v69_v21, 0.0  ;;  %v71_v24 = vsel %vm39_vm0, %v67_v22, 0.0 }
  0x7e   :  { %v51_v25 = vpop.xlane.xlu1 %50  ;;  %78 = vadd.xlane.f32.xlu0 %v77_v23  ;;  %72 = vadd.xlane.f32.xlu2 %v71_v24  ;;  %v45_v26 = vpop.xlane.xlu0 %44 }
  0x7f   :  { %v62_v27 = vmul.f32 %v1909_v14, %v51_v25  ;;  %v60_v28 = vmul.f32 %v1909_v14, %v45_v26 }
  0x81   :  { %v1928_v29 = vsub.f32 %v1898_v4, %v62_v27  ;;  %v1931_v30 = vsub.f32 %v1903_v5, %v60_v28 }
  0x83   :  { %v70_v31 = vmul.f32 %v1928_v29, %v1928_v29  ;;  %v68_v32 = vmul.f32 %v1931_v30, %v1931_v30 }
  0x85   :  { %v80_v33 = vsel %vm39_vm0, %v70_v31, 0.0  ;;  %v74_v34 = vsel %vm39_vm0, %v68_v32, 0.0 }
  0x86   :  { %81 = vadd.xlane.f32.xlu1 %v80_v33  ;;  %75 = vadd.xlane.f32.xlu2 %v74_v34 }
  0xf1   :  { %v73_v37 = vpop.xlane.xlu2 %72  ;;  %v79_v38 = vpop.xlane.xlu0 %78 }
  0xf2   :  { %v83_v39 = vmul.f32 %v73_v37, %v1909_v14  ;;  %v85_v40 = vmul.f32 %v79_v38, %v1909_v14 }
  0xf4   :  { %v87_v41 = vadd.f32 1e-05, %v83_v39  ;;  %v89_v42 = vadd.f32 1e-05, %v85_v40 }
  0xf6   :  { %1768 = vrsqrt.f32 %v87_v41  ;;  %vm117_vm2 = vweird.f32 %v89_v42  ;;  %vm97_vm5 = vweird.f32 %v87_v41 }
  0xf7   :  { %1770 = vrsqrt.f32 %v89_v42 }
  0xf9   :  { %v82_v43 = vpop.xlane.xlu1 %81  ;;  %v76_v44 = vpop.xlane.xlu2 %75 }
  0xfa   :  { %v86_v45 = vmul.f32 %v82_v43, %v1909_v14  ;;  %v84_v46 = vmul.f32 %v76_v44, %v1909_v14 }
  0xfc   :  { %v1769_v47 = vpop.eup %1768  ;;  %v90_v48 = vadd.f32 1e-05, %v86_v45  ;;  %v88_v49 = vadd.f32 1e-05, %v84_v46 }
  0xfd   :  { %v1771_v50 = vpop.eup %1770  ;;  %v92_v51 = vmul.f32 %v1769_v47, %v87_v41  ;;  %vm98_vm4 = vweird.f32 %v1769_v47 }
  0xfe   :  { %v112_v52 = vmul.f32 %v1771_v50, %v89_v42  ;;  %1772 = vrsqrt.f32 %v90_v48  ;;  %vm118_vm3 = vweird.f32 %v1771_v50  ;;  %vm99_vm7 = vmor %vm97_vm5, %vm98_vm4  ;;  %vm127_vm8 = vweird.f32 %v90_v48 }
  0xff   :  { %v93_v53 = vmul.f32 %v1769_v47, %v92_v51  ;;  %1774 = vrsqrt.f32 %v88_v49  ;;  %vm119_vm6 = vmor %vm117_vm2, %vm118_vm3  ;;  %vm107_vm12 = vweird.f32 %v88_v49 }
 0x100   :  { %v113_v54 = vmul.f32 %v1771_v50, %v112_v52 }
 0x101   :  { %v94_v55 = vmul.f32 0.5, %v93_v53 }
 0x102   :  { %v114_v56 = vmul.f32 0.5, %v113_v54 }
 0x103   :  { %v95_v57 = vsub.f32 1.5, %v94_v55 }
 0x104   :  { %v1773_v59 = vpop.eup %1772  ;;  %v115_v60 = vsub.f32 1.5, %v114_v56 }
 0x105   :  { %v1775_v61 = vpop.eup %1774  ;;  %v96_v62 = vmul.f32 %v1769_v47, %v95_v57  ;;  %v122_v63 = vmul.f32 %v1773_v59, %v90_v48  ;;  %vm128_vm9 = vweird.f32 %v1773_v59 }
 0x106   :  { %v116_v2 = vmul.f32 %v1771_v50, %v115_v60  ;;  %v102_v3 = vmul.f32 %v1775_v61, %v88_v49  ;;  %vm129_vm10 = vmor %vm127_vm8, %vm128_vm9  ;;  %vm108_vm11 = vweird.f32 %v1775_v61 }
 0x107   :  { %v100_v7 = vsel %vm99_vm7, %v1769_v47, %v96_v62  ;;  %v123_v8 = vmul.f32 %v1773_v59, %v122_v63  ;;  %vm109_vm13 = vmor %vm107_vm12, %vm108_vm11 }
 0x108   :  { %v120_v9 = vsel %vm119_vm6, %v1771_v50, %v116_v2  ;;  %v103_v10 = vmul.f32 %v1775_v61, %v102_v3  ;;  %v131_v11 = vmul.f32 %v100_v7, %v1917_v20 }
 0x109   :  { %v124_v13 = vmul.f32 0.5, %v123_v8  ;;  %v133_v15 = vmul.f32 %v120_v9, %v1914_v19 }
 0x10a   :  { %v104_v16 = vmul.f32 0.5, %v103_v10  ;;  %v136_v17 = vmul.f32 %v135_v6, %v131_v11 }
 0x10b   :  { %v125_v18 = vsub.f32 1.5, %v124_v13  ;;  %v138_v21 = vmul.f32 %v135_v6, %v133_v15 }
 0x10c   :  { %v105_v22 = vsub.f32 1.5, %v104_v16  ;;  %v141_v23 = vadd.f32 %v140_v12, %v136_v17 }
 0x10d   :  { %v126_v24 = vmul.f32 %v1773_v59, %v125_v18  ;;  %v143_v25 = vadd.f32 %v140_v12, %v138_v21 }
 0x10e   :  { %v106_v26 = vmul.f32 %v1775_v61, %v105_v22  ;;  %1720 = vmatmul.msk.f32.vlgmr.msra.gmra.mxu0 %vm39_vm0, %v141_v23 }
 0x10f   :  { %v130_v20 = vsel %vm129_vm10, %v1773_v59, %v126_v24  ;;  %1722 = vmatmul.msk.f32.vlgmr.msra.gmra.mxu1 %vm39_vm0, %v143_v25 }
 0x110   :  { %v110_v27 = vsel %vm109_vm13, %v1775_v61, %v106_v26  ;;  %v134_v19 = vmul.f32 %v130_v20, %v1928_v29 }
 0x111   :  { %v132_v28 = vmul.f32 %v110_v27, %v1931_v30 }
 0x112   :  { %v139_v31 = vmul.f32 %v135_v6, %v134_v19 }
 0x113   :  { %v137_v32 = vmul.f32 %v135_v6, %v132_v28 }
 0x114   :  { %v144_v33 = vadd.f32 %v140_v12, %v139_v31 }
 0x115   :  { %v142_v34 = vadd.f32 %v140_v12, %v137_v32 }
 0x117   :  { %1721 = vmatmul.msk.f32.gmra.mxu0 %vm39_vm0, %v142_v34  ;;  %1723 = vmatmul.msk.f32.gmra.mxu1 %vm39_vm0, %v144_v33 }
 0x18b   :  { %v1964_v35 = vpop.f32.mrf.mxu0 }
 0x18c   :  { %v1966_v36 = vpop.f32.mrf.mxu1  ;;  %v186_v37 = vmul.f32 %v1964_v35, %v1964_v35 }
 0x18d   :  { %v425_v29 = vmul.f32 %v1966_v36, %v1966_v36 }
 0x18e   :  { %v188_v41 = vsel %vm39_vm0, %v186_v37, 0.0  ;;  %v227_v42 = vsel %vm226_vm14, %v186_v37, 0.0 }
 0x18f   :  { %v427_v43 = vsel %vm39_vm0, %v425_v29, 0.0  ;;  %v465_v44 = vsel %vm226_vm14, %v425_v29, 0.0 }
 0x194   :  { %v1972_v30 = vpop.f32.mrf.mxu0  ;;  %v1974_v38 = vpop.f32.mrf.mxu1 }
 0x195   :  { %v187_v39 = vmul.f32 %v1972_v30, %v1972_v30  ;;  %v426_v40 = vmul.f32 %v1974_v38, %v1974_v38 }
 0x197   :  { %v189_v45 = vsel %vm39_vm0, %v187_v39, 0.0  ;;  %v228_v46 = vsel %vm226_vm14, %v187_v39, 0.0  ;;  %v428_v47 = vsel %vm39_vm0, %v426_v40, 0.0  ;;  %v466_v48 = vsel %vm226_vm14, %v426_v40, 0.0 }
 0x198   :  { %v190_v49 = vadd.f32 %v189_v45, %v188_v41  ;;  %v229_v50 = vadd.f32 %v228_v46, %v227_v42  ;;  %v429_v51 = vadd.f32 %v428_v47, %v427_v43  ;;  %v467_v52 = vadd.f32 %v466_v48, %v465_v44 }
 0x19a   :  { %v191_v53 = vrot.slane %v190_v49, 4  ;;  %v230_v54 = vrot.slane %v229_v50, 4  ;;  %v430_v55 = vrot.slane %v429_v51, 4  ;;  %v468_v56 = vrot.slane %v467_v52, 4 }
 0x19c   :  { %v192_v57 = vadd.f32 %v191_v53, %v190_v49  ;;  %v231_v59 = vadd.f32 %v230_v54, %v229_v50  ;;  %v431_v60 = vadd.f32 %v430_v55, %v429_v51  ;;  %v469_v61 = vadd.f32 %v468_v56, %v467_v52 }
 0x19e   :  { %v193_v62 = vrot.slane %v192_v57, 2  ;;  %v232_v63 = vrot.slane %v231_v59, 2  ;;  %v432_v2 = vrot.slane %v431_v60, 2  ;;  %v470_v3 = vrot.slane %v469_v61, 2 }
 0x1a0   :  { %v194_v6 = vadd.f32 %v193_v62, %v192_v57  ;;  %v233_v7 = vadd.f32 %v232_v63, %v231_v59  ;;  %v433_v8 = vadd.f32 %v432_v2, %v431_v60  ;;  %v471_v9 = vadd.f32 %v470_v3, %v469_v61 }
 0x1a2   :  { %v195_v10 = vrot.slane %v194_v6, 1  ;;  %v234_v11 = vrot.slane %v233_v7, 1  ;;  %v472_v12 = vrot.slane %v471_v9, 1  ;;  %v434_v13 = vrot.slane %v433_v8, 1 }
 0x1a4   :  { %v196_v15 = vadd.f32 %v195_v10, %v194_v6  ;;  %v235_v16 = vadd.f32 %v234_v11, %v233_v7  ;;  %v473_v17 = vadd.f32 %v472_v12, %v471_v9  ;;  %v1984_v18 = vadd.f32 %v434_v13, %v433_v8 }
 0x1a6   :  { %1776 = vrsqrt.f32 %v196_v15  ;;  %vm204_vm15 = vcmp.eq.f32.partialorder %v196_v15, inf  ;;  %v207_v45 = vand.u32 2147483648, %v196_v15  ;;  %vm243_vm1 = vcmp.eq.f32.partialorder %v235_v16, inf }
 0x1a7   :  { %1778 = vrsqrt.f32 %v235_v16  ;;  %v246_v47 = vand.u32 2147483648, %v235_v16  ;;  %vm206_vm2 = vcmp.eq.f32.partialorder %v196_v15, 0.0  ;;  %vm245_vm3 = vcmp.eq.f32.partialorder %v235_v16, 0.0 }
 0x1a8   :  { %1780 = vrsqrt.f32 %v473_v17  ;;  %vm481_vm4 = vcmp.eq.f32.partialorder %v473_v17, inf  ;;  %v484_v53 = vand.u32 2147483648, %v473_v17  ;;  %vm483_vm5 = vcmp.eq.f32.partialorder %v473_v17, 0.0 }
 0x1a9   :  { %1782 = vrsqrt.f32 %v1984_v18  ;;  %vm443_vm6 = vcmp.eq.f32.partialorder %v1984_v18, inf }
 0x1ac   :  { %v1777_v21 = vpop.eup %1776 }
 0x1ad   :  { %v1779_v22 = vpop.eup %1778  ;;  %v198_v23 = vmul.f32 %v1777_v21, %v196_v15 }
 0x1ae   :  { %v237_v24 = vmul.f32 %v1779_v22, %v235_v16  ;;  %v1781_v25 = vpop.eup %1780 }
 0x1af   :  { %v199_v26 = vmul.f32 %v1777_v21, %v198_v23  ;;  %v475_v27 = vmul.f32 %v1781_v25, %v473_v17  ;;  %v1783_v19 = vpop.eup %1782 }
 0x1b0   :  { %v238_v20 = vmul.f32 %v1779_v22, %v237_v24  ;;  %v437_v29 = vmul.f32 %v1783_v19, %v1984_v18 }
 0x1b1   :  { %v200_v28 = vmul.f32 0.5, %v199_v26  ;;  %v476_v32 = vmul.f32 %v1781_v25, %v475_v27 }
 0x1b2   :  { %v239_v31 = vmul.f32 0.5, %v238_v20  ;;  %v438_v46 = vmul.f32 %v1783_v19, %v437_v29 }
 0x1b3   :  { %v201_v33 = vsub.f32 1.5, %v200_v28  ;;  %v477_v37 = vmul.f32 0.5, %v476_v32 }
 0x1b4   :  { %v240_v34 = vsub.f32 1.5, %v239_v31  ;;  %v439_v57 = vmul.f32 0.5, %v438_v46 }
 0x1b5   :  { %v202_v39 = vmul.f32 %v1777_v21, %v201_v33  ;;  %v478_v41 = vsub.f32 1.5, %v477_v37 }
 0x1b6   :  { %v241_v40 = vmul.f32 %v1779_v22, %v240_v34  ;;  %v440_v61 = vsub.f32 1.5, %v439_v57 }
 0x1b7   :  { %v203_v42 = vmul.f32 %v202_v39, %v196_v15  ;;  %v479_v44 = vmul.f32 %v1781_v25, %v478_v41 }
 0x1b8   :  { %v242_v43 = vmul.f32 %v241_v40, %v235_v16  ;;  %v441_v3 = vmul.f32 %v1783_v19, %v440_v61 }
 0x1b9   :  { %v205_v48 = vsel %vm204_vm15, %v196_v15, %v203_v42  ;;  %v480_v50 = vmul.f32 %v479_v44, %v473_v17  ;;  %v446_v42 = vand.u32 2147483648, %v1984_v18 }
 0x1ba   :  { %v244_v49 = vsel %vm243_vm1, %v235_v16, %v242_v43  ;;  %v208_v51 = vsel %vm206_vm2, %v207_v45, %v205_v48  ;;  %v442_v16 = vmul.f32 %v441_v3, %v1984_v18 }
 0x1bb   :  { %v247_v52 = vsel %vm245_vm3, %v246_v47, %v244_v49  ;;  %v209_v54 = vmax.f32 %v208_v51, 1e-12  ;;  %v482_v56 = vsel %vm481_vm4, %v473_v17, %v480_v50  ;;  %vm445_vm4 = vcmp.eq.f32.partialorder %v1984_v18, 0.0 }
 0x1bc   :  { %v248_v55 = vmax.f32 %v247_v52, 1e-12  ;;  %v485_v59 = vsel %vm483_vm5, %v484_v53, %v482_v56  ;;  %v444_v33 = vsel %vm443_vm6, %v1984_v18, %v442_v16 }
 0x1bd   :  { %1784 = vrcp.f32 %v209_v54  ;;  %v486_v60 = vmax.f32 %v485_v59, 1e-12  ;;  %v219_v8 = vand.u32 2147483647, %v209_v54  ;;  %v221_v12 = vand.u32 2147483648, %v209_v54 }
 0x1be   :  { %1786 = vrcp.f32 %v248_v55  ;;  %v260_v11 = vand.u32 2147483648, %v248_v55  ;;  %v258_v21 = vand.u32 2147483647, %v248_v55  ;;  %vm215_vm9 = vweird.f32 %v209_v54 }
 0x1bf   :  { %1788 = vrcp.f32 %v486_v60  ;;  %vm254_vm10 = vweird.f32 %v248_v55  ;;  %vm220_vm11 = vcmp.eq.f32.partialorder %v219_v8, 8.507059e+37  ;;  %v498_v26 = vand.u32 2147483648, %v486_v60 }
 0x1c0   :  { %v261_v25 = vor.u32 1.1754944e-38, %v260_v11  ;;  %v222_v20 = vor.u32 1.1754944e-38, %v221_v12  ;;  %v496_v19 = vand.u32 2147483647, %v486_v60  ;;  %vm259_vm15 = vcmp.eq.f32.partialorder %v258_v21, 8.507059e+37 }
 0x1c1   :  { %vm492_vm1 = vweird.f32 %v486_v60  ;;  %v499_v40 = vor.u32 1.1754944e-38, %v498_v26  ;;  %v447_v46 = vsel %vm445_vm4, %v446_v42, %v444_v33  ;;  %v30_v26 = vld [vmem:[%s2834_s2 + $0x28] sm:$0xff] }
 0x1c2   :  { %vm497_vm3 = vcmp.eq.f32.partialorder %v496_v19, 8.507059e+37  ;;  %v448_v50 = vmax.f32 %v447_v46, 1e-12 }
 0x1c3   :  { %v1785_v62 = vpop.eup %1784 }
 0x1c4   :  { %v1787_v63 = vpop.eup %1786  ;;  %v211_v2 = vmul.f32 %v1785_v62, %v209_v54  ;;  %vm216_vm7 = vweird.f32 %v1785_v62  ;;  %1790 = vrcp.f32 %v448_v50  ;;  %v460_v56 = vand.u32 2147483648, %v448_v50 }
 0x1c5   :  { %v250_v6 = vmul.f32 %v1787_v63, %v248_v55  ;;  %v1789_v9 = vpop.eup %1788  ;;  %vm255_vm8 = vweird.f32 %v1787_v63  ;;  %vm217_vm12 = vmor %vm215_vm9, %vm216_vm7  ;;  %vm454_vm6 = vweird.f32 %v448_v50  ;;  %v458_v57 = vand.u32 2147483647, %v448_v50 }
 0x1c6   :  { %v212_v7 = vsub.f32 1.0, %v211_v2  ;;  %v488_v13 = vmul.f32 %v1789_v9, %v486_v60  ;;  %vm256_vm13 = vmor %vm254_vm10, %vm255_vm8  ;;  %vm493_vm14 = vweird.f32 %v1789_v9  ;;  %v461_v60 = vor.u32 1.1754944e-38, %v460_v56 }
 0x1c7   :  { %v251_v10 = vsub.f32 1.0, %v250_v6  ;;  %vm494_vm2 = vmor %vm492_vm1, %vm493_vm14  ;;  %vm459_vm8 = vcmp.eq.f32.partialorder %v458_v57, 8.507059e+37 }
 0x1c8   :  { %v213_v15 = vmul.f32 %v1785_v62, %v212_v7  ;;  %v489_v22 = vsub.f32 1.0, %v488_v13 }
 0x1c9   :  { %v252_v17 = vmul.f32 %v1787_v63, %v251_v10 }
 0x1ca   :  { %v214_v23 = vadd.f32 %v1785_v62, %v213_v15  ;;  %v490_v27 = vmul.f32 %v1789_v9, %v489_v22  ;;  %v1791_v52 = vpop.eup %1790  ;;  %v27_v15 = vld [vmem:[%s2834_s2 + $0x10] sm:$0xff] }
 0x1cb   :  { %v253_v24 = vadd.f32 %v1787_v63, %v252_v17  ;;  %v450_v53 = vmul.f32 %v1791_v52, %v448_v50  ;;  %vm455_vm5 = vweird.f32 %v1791_v52  ;;  %v29_v17 = vld [vmem:[%s2834_s2 + $0x20] sm:$0xff] }
 0x1cc   :  { %v218_v28 = vsel %vm217_vm12, %v1785_v62, %v214_v23  ;;  %v491_v37 = vadd.f32 %v1789_v9, %v490_v27  ;;  %vm456_vm7 = vmor %vm454_vm6, %vm455_vm5 }
 0x1cd   :  { %v257_v31 = vsel %vm256_vm13, %v1787_v63, %v253_v24  ;;  %v223_v32 = vsel %vm220_vm11, %v222_v20, %v218_v28  ;;  %v451_v54 = vsub.f32 1.0, %v450_v53  ;;  %v28_v24 = vld [vmem:[%s2834_s2 + $0x18] sm:$0xff] }
 0x1ce   :  { %v262_v34 = vsel %vm259_vm15, %v261_v25, %v257_v31  ;;  %v224_v29 = vmul.f32 %v223_v32, %v1964_v35  ;;  %v495_v43 = vsel %vm494_vm2, %v1789_v9, %v491_v37  ;;  %v225_v51 = vmul.f32 %v223_v32, %v1972_v30 }
 0x1cf   :  { %v264_v39 = vmul.f32 %v262_v34, %v1972_v30  ;;  %v263_v41 = vmul.f32 %v262_v34, %v1964_v35  ;;  %v500_v44 = vsel %vm497_vm3, %v499_v40, %v495_v43  ;;  %v452_v18 = vmul.f32 %v1791_v52, %v451_v54 }
 0x1d0   :  { %265 = vxpose.xlu1.b32.start [1/2] (short) (narrow) %v224_v29, 16  ;;  %v502_v47 = vmul.f32 %v500_v44, %v1974_v38  ;;  %v501_v48 = vmul.f32 %v500_v44, %v1966_v36 }
 0x1d1   :  { %v1755_v45 = vpack.i.bf16 %v263_v41, %v264_v39  ;;  %v453_v55 = vadd.f32 %v1791_v52, %v452_v18 }
 0x1d2   :  { %v1760_v49 = vpack.i.bf16 %v501_v48, %v502_v47 }
 0x1d3   :  { %1756 = vrot.lane.b32.xlu2 %v1755_v45, %s1858_s25  ;;  %v457_v59 = vsel %vm456_vm7, %v1791_v52, %v453_v55 }
 0x1d4   :  { %1761 = vrot.lane.b32.xlu0 %v1760_v49, %s1858_s25  ;;  %v462_v61 = vsel %vm459_vm8, %v461_v60, %v457_v59 }
 0x1d5   :  { %v463_v62 = vmul.f32 %v462_v61, %v1966_v36  ;;  %v464_v63 = vmul.f32 %v462_v61, %v1974_v38 }
 0x1d8   :  { %266 = vxpose.xlu1.b32.end [2/2] (short) (narrow) %v225_v51, 16 }
 0x1f9   :  { %503 = vxpose.xlu2.b32.start [1/2] (short) (narrow) %v463_v62, 16 }
 0x201   :  { %504 = vxpose.xlu2.b32.end [2/2] (short) (narrow) %v464_v63, 16 }
 0x22d   :  { %v1757_v2 = vpop.permute.xlu2 %1756 }
 0x22e   :  { %v1758_v3 = vunpack.i.l.bf16 %v1757_v2  ;;  %v1759_v6 = vunpack.i.h.bf16 %v1757_v2 }
 0x230   :  { %325 = vmatpush.msrb.mxu1 %v1758_v3 }
 0x232   :  { %326 = vmatpush.msrb.mxu1 %v1759_v6 }
 0x246   :  { %v1762_v7 = vpop.permute.xlu0 %1761 }
 0x247   :  { %v1763_v8 = vunpack.i.l.bf16 %v1762_v7  ;;  %v1764_v9 = vunpack.i.h.bf16 %v1762_v7 }
 0x249   :  { %563 = vmatpush.msra.mxu3 %v1763_v8 }
 0x24b   :  { %564 = vmatpush.msra.mxu3 %v1764_v9 }
 0x274   :  { %v281_v10 = vpop.trf.xlu1 }
 0x275   :  { %1724 = vmatmul.msk.f32.vlgmr.msrb.gmra.mxu1 %vm39_vm0, %v281_v10 }
 0x27c   :  { %v282_v11 = vpop.trf.xlu1 }
 0x27d   :  { %1725 = vmatmul.msk.f32.gmra.mxu1 %vm39_vm0, %v282_v11 }
 0x292   :  { %v519_v12 = vpop.trf.xlu2 }
 0x293   :  { %1730 = vmatmul.msk.f32.vlgmr.msra.gmra.mxu3 %vm39_vm0, %v519_v12 }
 0x29a   :  { %v520_v13 = vpop.trf.xlu2 }
 0x29b   :  { %1731 = vmatmul.msk.f32.gmra.mxu3 %vm39_vm0, %v520_v13 }
 0x2f2   :  { %v328_v16 = vpop.f32.mrf.mxu1 }
 0x2f3   :  { %v334_v21 = vmul.f32 %v328_v16, %v27_v15 }
 0x2f5   :  { %v336_v22 = vadd.f32 %v334_v21, %v29_v17 }
 0x2f7   :  { %v338_v23 = vsel %vm39_vm0, %v336_v22, -inf }
 0x2f8   :  { %339 = vmax.xlane.f32.xlu0 %v338_v23 }
 0x2fa   :  { %v331_v25 = vpop.f32.mrf.mxu1 }
 0x2fb   :  { %v335_v20 = vmul.f32 %v331_v25, %v28_v24 }
 0x2fd   :  { %v337_v27 = vadd.f32 %v335_v20, %v30_v26 }
 0x2ff   :  { %v341_v19 = vsel %vm39_vm0, %v337_v27, -inf }
 0x300   :  { %342 = vmax.xlane.f32.xlu0 %v341_v19 }
 0x314   :  { %388 = vrot.lane.b32.xlu0 %v1964_v35, %s1859_s7 }
 0x316   :  { %v566_v28 = vpop.f32.mrf.mxu3 }
 0x317   :  { %v572_v31 = vmul.f32 %v566_v28, %v27_v15 }
 0x319   :  { %v574_v32 = vadd.f32 %v572_v31, %v29_v17  ;;  %v21_v31 = vld [vmem:[%s2833_s1 + $0x18] sm:$0xff] }
 0x31a   :  { %690 = vmatpush.msrb.mxu3 %v21_v31 }
 0x31b   :  { %v576_v33 = vsel %vm39_vm0, %v574_v32, -inf }
 0x31c   :  { %577 = vmax.xlane.f32.xlu1 %v576_v33  ;;  %390 = vrot.lane.b32.xlu0 %v1972_v30, %s1859_s7 }
 0x31e   :  { %v569_v34 = vpop.f32.mrf.mxu3 }
 0x31f   :  { %v573_v37 = vmul.f32 %v569_v34, %v28_v24 }
 0x321   :  { %v575_v29 = vadd.f32 %v573_v37, %v30_v26 }
 0x323   :  { %v579_v39 = vsel %vm39_vm0, %v575_v29, -inf }
 0x324   :  { %580 = vmax.xlane.f32.xlu2 %v579_v39 }
 0x36b   :  { %v340_v40 = vpop.xlane.xlu0 %339 }
 0x36c   :  { %v344_v41 = vsub.f32 %v336_v22, %v340_v40 }
 0x36e   :  { %v346_v42 = vmul.f32 1.442695, %v344_v41 }
 0x370   :  { %1792 = vpow2.f32 %v346_v42 }
 0x373   :  { %v343_v44 = vpop.xlane.xlu0 %342 }
 0x374   :  { %v345_v30 = vsub.f32 %v337_v27, %v343_v44 }
 0x376   :  { %v2027_v35 = vpop.eup %1792  ;;  %v348_v48 = vmul.f32 1.442695, %v345_v30 }
 0x377   :  { %v350_v43 = vsel %vm39_vm0, %v2027_v35, 0.0 }
 0x378   :  { %351 = vadd.xlane.f32.xlu0 %v350_v43 }
 0x386   :  { %v389_v57 = vpop.permute.xlu0 %388 }
 0x38e   :  { %v391_v59 = vpop.permute.xlu0 %390 }
 0x38f   :  { %v578_v45 = vpop.xlane.xlu1 %577 }
 0x390   :  { %v582_v46 = vsub.f32 %v574_v32, %v578_v45 }
 0x392   :  { %v584_v47 = vmul.f32 1.442695, %v582_v46 }
 0x394   :  { %1794 = vpow2.f32 %v584_v47 }
 0x395   :  { %1796 = vpow2.f32 %v348_v48 }
 0x397   :  { %v581_v53 = vpop.xlane.xlu2 %580 }
 0x398   :  { %v583_v54 = vsub.f32 %v575_v29, %v581_v53 }
 0x39a   :  { %v2031_v49 = vpop.eup %1794  ;;  %v586_v18 = vmul.f32 1.442695, %v583_v54  ;;  %v20_v54 = vld [vmem:[%s2833_s1 + $0x10] sm:$0xff] }
 0x39b   :  { %v588_v50 = vsel %vm39_vm0, %v2031_v49, 0.0  ;;  %v1797_v51 = vpop.eup %1796  ;;  %691 = vmatpush.msrb.mxu3 %v20_v54 }
 0x39c   :  { %589 = vadd.xlane.f32.xlu0 %v588_v50  ;;  %v353_v52 = vsel %vm39_vm0, %v1797_v51, 0.0  ;;  %1798 = vpow2.f32 %v586_v18 }
 0x3a2   :  { %v2038_v55 = vpop.eup %1798 }
 0x3a3   :  { %v591_v56 = vsel %vm39_vm0, %v2038_v55, 0.0 }
 0x3a4   :  { %354 = vadd.xlane.f32.xlu0 %v353_v52 }
 0x3b8   :  { %626 = vrot.lane.b32.xlu0 %v1966_v36, %s1859_s7 }
 0x3e2   :  { %592 = vadd.xlane.f32.xlu0 %v591_v56 }
 0x3eb   :  { %v352_v60 = vpop.xlane.xlu0 %351 }
 0x3ec   :  { %1800 = vrcp.f32 %v352_v60  ;;  %vm361_vm11 = vweird.f32 %v352_v60  ;;  %v367_v12 = vand.u32 2147483648, %v352_v60  ;;  %v365_v15 = vand.u32 2147483647, %v352_v60 }
 0x3ee   :  { %v368_v22 = vor.u32 1.1754944e-38, %v367_v12  ;;  %vm366_vm1 = vcmp.eq.f32.partialorder %v365_v15, 8.507059e+37 }
 0x3f2   :  { %v1801_v36 = vpop.eup %1800 }
 0x3f3   :  { %v357_v62 = vmul.f32 %v1801_v36, %v352_v60  ;;  %vm362_vm9 = vweird.f32 %v1801_v36 }
 0x3f4   :  { %vm363_vm13 = vmor %vm361_vm11, %vm362_vm9 }
 0x3f5   :  { %v358_v2 = vsub.f32 1.0, %v357_v62 }
 0x3f6   :  { %628 = vrot.lane.b32.xlu0 %v1974_v38, %s1859_s7 }
 0x3f7   :  { %v359_v6 = vmul.f32 %v1801_v36, %v358_v2 }
 0x3f9   :  { %v360_v38 = vadd.f32 %v1801_v36, %v359_v6 }
 0x3fb   :  { %v364_v21 = vsel %vm363_vm13, %v1801_v36, %v360_v38 }
 0x3fc   :  { %v369_v25 = vsel %vm366_vm1, %v368_v22, %v364_v21  ;;  %vm818_vm1 = vcmask 1044480  }
 0x3fd   :  { %v370_v26 = vmul.f32 %v2027_v35, %v369_v25 }
 0x40f   :  { %v2044_v61 = vpop.xlane.xlu0 %589 }
 0x410   :  { %vm599_vm4 = vweird.f32 %v2044_v61  ;;  %v605_v35 = vand.u32 2147483648, %v2044_v61  ;;  %v603_v43 = vand.u32 2147483647, %v2044_v61 }
 0x412   :  { %v606_v47 = vor.u32 1.1754944e-38, %v605_v35  ;;  %vm604_vm9 = vcmp.eq.f32.partialorder %v603_v43, 8.507059e+37 }
 0x417   :  { %v355_v63 = vpop.xlane.xlu0 %354 }
 0x418   :  { %1802 = vrcp.f32 %v355_v63  ;;  %v382_v9 = vand.u32 2147483648, %v355_v63  ;;  %v380_v11 = vand.u32 2147483647, %v355_v63  ;;  %vm376_vm12 = vweird.f32 %v355_v63 }
 0x419   :  { %1804 = vrcp.f32 %v2044_v61 }
 0x41a   :  { %v383_v16 = vor.u32 1.1754944e-38, %v382_v9  ;;  %vm381_vm15 = vcmp.eq.f32.partialorder %v380_v11, 8.507059e+37 }
 0x41e   :  { %v1803_v3 = vpop.eup %1802 }
 0x41f   :  { %v372_v7 = vmul.f32 %v1803_v3, %v355_v63  ;;  %vm377_vm10 = vweird.f32 %v1803_v3  ;;  %v1805_v27 = vpop.eup %1804 }
 0x420   :  { %vm378_vm14 = vmor %vm376_vm12, %vm377_vm10  ;;  %v595_v19 = vmul.f32 %v1805_v27, %v2044_v61  ;;  %vm600_vm2 = vweird.f32 %v1805_v27 }
 0x421   :  { %v373_v8 = vsub.f32 1.0, %v372_v7  ;;  %vm601_vm5 = vmor %vm599_vm4, %vm600_vm2  ;;  %vm844_vm2 = vcmask 1043456  }
 0x422   :  { %v596_v32 = vsub.f32 1.0, %v595_v19 }
 0x423   :  { %v374_v10 = vmul.f32 %v1803_v3, %v373_v8 }
 0x424   :  { %v597_v34 = vmul.f32 %v1805_v27, %v596_v32 }
 0x425   :  { %v375_v13 = vadd.f32 %v1803_v3, %v374_v10 }
 0x426   :  { %v598_v40 = vadd.f32 %v1805_v27, %v597_v34 }
 0x427   :  { %v379_v17 = vsel %vm378_vm14, %v1803_v3, %v375_v13 }
 0x428   :  { %v384_v23 = vsel %vm381_vm15, %v383_v16, %v379_v17  ;;  %v602_v30 = vsel %vm601_vm5, %v1805_v27, %v598_v40 }
 0x429   :  { %v385_v24 = vmul.f32 %v1797_v51, %v384_v23  ;;  %v607_v51 = vsel %vm604_vm9, %v606_v47, %v602_v30 }
 0x42a   :  { %v627_v20 = vpop.permute.xlu0 %626  ;;  %v608_v52 = vmul.f32 %v2031_v49, %v607_v51 }
 0x42b   :  { %1726 = vmatpush.xpose.msk.msra.mxu2 %vm39_vm0, %v385_v24 }
 0x42f   :  { %1727 = vmatpush.xpose.msk.msra.mxu2 %vm39_vm0, %v370_v26 }
 0x432   :  { %1728 = vmatmul.msk.f32.vlgmr.msra.gmra.mxu2 %vm39_vm0, %v389_v57  ;;  %v663_v57 = vperm.slane %v1952_v58, 2 }
 0x43a   :  { %1729 = vmatmul.msk.f32.gmra.mxu2 %vm39_vm0, %v391_v59  ;;  %v705_v59 = vperm.slane %v1952_v58, 3 }
 0x455   :  { %v593_v28 = vpop.xlane.xlu0 %592 }
 0x456   :  { %1806 = vrcp.f32 %v593_v28  ;;  %v620_v39 = vand.u32 2147483648, %v593_v28  ;;  %v618_v42 = vand.u32 2147483647, %v593_v28  ;;  %vm614_vm6 = vweird.f32 %v593_v28 }
 0x458   :  { %v621_v45 = vor.u32 1.1754944e-38, %v620_v39  ;;  %vm619_vm8 = vcmp.eq.f32.partialorder %v618_v42, 8.507059e+37 }
 0x45c   :  { %v1807_v33 = vpop.eup %1806 }
 0x45d   :  { %v610_v37 = vmul.f32 %v1807_v33, %v593_v28  ;;  %vm615_vm3 = vweird.f32 %v1807_v33 }
 0x45e   :  { %vm616_vm7 = vmor %vm614_vm6, %vm615_vm3  ;;  %vm870_vm3 = vcmask 1042432   ;;  %vm896_vm6 = vcmask 1040384  }
 0x45f   :  { %v611_v29 = vsub.f32 1.0, %v610_v37 }
 0x461   :  { %v612_v41 = vmul.f32 %v1807_v33, %v611_v29 }
 0x463   :  { %v613_v44 = vadd.f32 %v1807_v33, %v612_v41 }
 0x465   :  { %v617_v46 = vsel %vm616_vm7, %v1807_v33, %v613_v44 }
 0x466   :  { %v622_v48 = vsel %vm619_vm8, %v621_v45, %v617_v46 }
 0x467   :  { %v623_v50 = vmul.f32 %v2038_v55, %v622_v48 }
 0x468   :  { %v629_v53 = vpop.permute.xlu0 %628 }
 0x469   :  { %1732 = vmatpush.xpose.msk.msra.mxu1 %vm39_vm0, %v623_v50 }
 0x46d   :  { %1733 = vmatpush.xpose.msk.msra.mxu1 %vm39_vm0, %v608_v52 }
 0x470   :  { %1734 = vmatmul.msk.f32.vlgmr.msra.gmra.mxu1 %vm39_vm0, %v627_v20 }
 0x478   :  { %1735 = vmatmul.msk.f32.gmra.mxu1 %vm39_vm0, %v629_v53 }
 0x4b5   :  { %v419_v18 = vpop.f32.mrf.mxu2 }
 0x4b6   :  { %1736 = vmatmul.msk.f32.vlgmr.msrb.gmra.mxu3 %vm39_vm0, %v419_v18 }
 0x4bd   :  { %v422_v55 = vpop.f32.mrf.mxu2 }
 0x4be   :  { %1737 = vmatmul.msk.f32.gmra.mxu3 %vm39_vm0, %v422_v55 }
 0x4ed   :  { %v657_v56 = vpop.f32.mrf.mxu1 }
 0x4ee   :  { %1738 = vmatmul.msk.f32.gmra.mxu3 %vm39_vm0, %v657_v56 }
 0x4f5   :  { %v660_v49 = vpop.f32.mrf.mxu1 }
 0x4f6   :  { %1739 = vmatmul.msk.f32.gmra.mxu3 %vm39_vm0, %v660_v49 }
 0x539   :  { %v693_v60 = vpop.f32.mrf.mxu3 }
 0x53a   :  { %v694_v61 = vadd.f32 %v693_v60, %v663_v57 }
 0x53c   :  { %v706_v36 = vmul.f32 %v705_v59, %v694_v61 }
 0x53e   :  { %v2075_v62 = vadd.f32 %v706_v36, %v1889_v1 }
 0x540   :  { %v714_v63 = vsel %vm39_vm0, %v2075_v62, 0.0 }
 0x541   :  { %715 = vadd.xlane.f32.xlu0 %v714_v63  ;;  %v696_v2 = vpop.f32.mrf.mxu3 }
 0x542   :  { %v697_v3 = vadd.f32 %v696_v2, %v663_v57 }
 0x544   :  { %v707_v6 = vmul.f32 %v705_v59, %v697_v3  ;;  %v2122_v3 = vperm.slane %v1952_v58, 5 }
 0x546   :  { %v2080_v7 = vadd.f32 %v707_v6, %v1903_v5 }
 0x548   :  { %v717_v8 = vsel %vm39_vm0, %v2080_v7, 0.0 }
 0x549   :  { %718 = vadd.xlane.f32.xlu2 %v717_v8 }
 0x571   :  { %v699_v9 = vpop.f32.mrf.mxu3 }
 0x572   :  { %v700_v10 = vadd.f32 %v699_v9, %v663_v57 }
 0x574   :  { %v708_v11 = vmul.f32 %v705_v59, %v700_v10 }
 0x576   :  { %v2085_v1 = vadd.f32 %v708_v11, %v1884_v0 }
 0x578   :  { %v720_v38 = vsel %vm39_vm0, %v2085_v1, 0.0 }
 0x579   :  { %721 = vadd.xlane.f32.xlu1 %v720_v38  ;;  %v702_v12 = vpop.f32.mrf.mxu3 }
 0x57a   :  { %v703_v13 = vadd.f32 %v702_v12, %v663_v57 }
 0x57c   :  { %v709_v15 = vmul.f32 %v705_v59, %v703_v13  ;;  %v2117_v59 = vperm.slane %v1952_v58, 4 }
 0x57e   :  { %v2090_v5 = vadd.f32 %v709_v15, %v1898_v4 }
 0x580   :  { %v723_v16 = vsel %vm39_vm0, %v2090_v5, 0.0 }
 0x581   :  { %724 = vadd.xlane.f32.xlu1 %v723_v16 }
 0x5b4   :  { %v716_v17 = vpop.xlane.xlu0 %715 }
 0x5b5   :  { %v726_v21 = vmul.f32 %v716_v17, %v1909_v14 }
 0x5b7   :  { %v730_v0 = vsub.f32 %v2075_v62, %v726_v21 }
 0x5b9   :  { %v734_v22 = vmul.f32 %v730_v0, %v730_v0 }
 0x5bb   :  { %v738_v23 = vsel %vm39_vm0, %v734_v22, 0.0  ;;  %v831_v22 = vld [vmem:[%s2834_s2 + $0x78] sm:$0xff] }
 0x5bc   :  { %v719_v24 = vpop.xlane.xlu2 %718  ;;  %739 = vadd.xlane.f32.xlu1 %v738_v23 }
 0x5bd   :  { %v727_v25 = vmul.f32 %v719_v24, %v1909_v14  ;;  %v857_v24 = vld [vmem:[%s2834_s2 + $0x98] sm:$0xff] }
 0x5bf   :  { %v731_v26 = vsub.f32 %v2080_v7, %v727_v25 }
 0x5c1   :  { %v735_v4 = vmul.f32 %v731_v26, %v731_v26 }
 0x5c3   :  { %v741_v20 = vsel %vm39_vm0, %v735_v4, 0.0 }
 0x5c4   :  { %742 = vadd.xlane.f32.xlu0 %v741_v20 }
 0x5ec   :  { %v722_v27 = vpop.xlane.xlu1 %721 }
 0x5ed   :  { %v728_v19 = vmul.f32 %v722_v27, %v1909_v14 }
 0x5ef   :  { %v2102_v28 = vsub.f32 %v2085_v1, %v728_v19 }
 0x5f1   :  { %v736_v31 = vmul.f32 %v2102_v28, %v2102_v28 }
 0x5f3   :  { %v744_v32 = vsel %vm39_vm0, %v736_v31, 0.0 }
 0x5f4   :  { %745 = vadd.xlane.f32.xlu2 %v744_v32  ;;  %v725_v33 = vpop.xlane.xlu1 %724 }
 0x5f5   :  { %v729_v34 = vmul.f32 %v725_v33, %v1909_v14 }
 0x5f7   :  { %v2109_v37 = vsub.f32 %v2090_v5, %v729_v34 }
 0x5f9   :  { %v737_v29 = vmul.f32 %v2109_v37, %v2109_v37 }
 0x5fb   :  { %v747_v39 = vsel %vm39_vm0, %v737_v29, 0.0 }
 0x5fc   :  { %748 = vadd.xlane.f32.xlu1 %v747_v39  ;;  %v883_v39 = vld [vmem:[%s2834_s2 + $0xb8] sm:$0xff] }
 0x62f   :  { %v740_v41 = vpop.xlane.xlu1 %739 }
 0x630   :  { %v750_v35 = vmul.f32 %v740_v41, %v1909_v14 }
 0x632   :  { %v754_v44 = vadd.f32 1e-05, %v750_v35 }
 0x634   :  { %vm764_vm14 = vweird.f32 %v754_v44 }
 0x637   :  { %v743_v40 = vpop.xlane.xlu0 %742 }
 0x638   :  { %v751_v42 = vmul.f32 %v743_v40, %v1909_v14 }
 0x63a   :  { %v755_v43 = vadd.f32 1e-05, %v751_v42 }
 0x63c   :  { %1808 = vrsqrt.f32 %v755_v43  ;;  %vm774_vm12 = vweird.f32 %v755_v43 }
 0x63d   :  { %1810 = vrsqrt.f32 %v754_v44 }
 0x642   :  { %v1809_v45 = vpop.eup %1808 }
 0x643   :  { %v1811_v46 = vpop.eup %1810  ;;  %v769_v30 = vmul.f32 %v1809_v45, %v755_v43  ;;  %vm775_vm10 = vweird.f32 %v1809_v45 }
 0x644   :  { %v759_v47 = vmul.f32 %v1811_v46, %v754_v44  ;;  %vm765_vm11 = vweird.f32 %v1811_v46  ;;  %vm776_vm13 = vmor %vm774_vm12, %vm775_vm10 }
 0x645   :  { %v770_v48 = vmul.f32 %v1809_v45, %v769_v30  ;;  %vm766_vm15 = vmor %vm764_vm14, %vm765_vm11  ;;  %vm932_vm11 = vcmask 1046528  }
 0x646   :  { %v760_v50 = vmul.f32 %v1811_v46, %v759_v47 }
 0x647   :  { %v771_v51 = vmul.f32 0.5, %v770_v48 }
 0x648   :  { %v761_v52 = vmul.f32 0.5, %v760_v50 }
 0x649   :  { %v772_v53 = vsub.f32 1.5, %v771_v51 }
 0x64a   :  { %v762_v54 = vsub.f32 1.5, %v761_v52 }
 0x64b   :  { %v773_v18 = vmul.f32 %v1809_v45, %v772_v53 }
 0x64c   :  { %v763_v55 = vmul.f32 %v1811_v46, %v762_v54 }
 0x64d   :  { %v777_v56 = vsel %vm776_vm13, %v1809_v45, %v773_v18  ;;  %v909_v45 = vld [vmem:[%s2834_s2 + $0xd8] sm:$0xff] }
 0x64e   :  { %v767_v49 = vsel %vm766_vm15, %v1811_v46, %v763_v55  ;;  %v799_v57 = vmul.f32 %v777_v56, %v731_v26  ;;  %v832_v56 = vld [vmem:[%s2834_s2 + $0x80] sm:$0xff] }
 0x64f   :  { %v798_v60 = vmul.f32 %v767_v49, %v730_v0  ;;  %v858_v49 = vld [vmem:[%s2834_s2 + $0xa0] sm:$0xff] }
 0x650   :  { %v804_v63 = vmul.f32 %v2117_v59, %v799_v57 }
 0x651   :  { %v803_v6 = vmul.f32 %v2117_v59, %v798_v60 }
 0x652   :  { %v2126_v8 = vadd.f32 %v2122_v3, %v804_v63 }
 0x653   :  { %v2129_v9 = vadd.f32 %v2122_v3, %v803_v6 }
 0x654   :  { %v820_v38 = vrot.slane %v2126_v8, 3  ;;  %v846_v12 = vrot.slane %v2126_v8, 4  ;;  %v872_v25 = vrot.slane %v2126_v8, 5  ;;  %v898_v32 = vrot.slane %v2126_v8, 7 }
 0x655   :  { %v819_v58 = vrot.slane %v2129_v9, 3  ;;  %v845_v16 = vrot.slane %v2129_v9, 4  ;;  %v871_v27 = vrot.slane %v2129_v9, 5  ;;  %v897_v41 = vrot.slane %v2129_v9, 7 }
 0x657   :  { %v2141_v0 = vsel %vm818_vm1, %v819_v58, %v820_v38  ;;  %v2151_v23 = vsel %vm844_vm2, %v845_v16, %v846_v12  ;;  %v2164_v29 = vsel %vm870_vm3, %v871_v27, %v872_v25  ;;  %v899_v46 = vsel %vm896_vm6, %v897_v41, %v898_v32 }
 0x658   :  { %v835_v4 = vmul.f32 %v831_v22, %v2141_v0  ;;  %v861_v20 = vmul.f32 %v857_v24, %v2151_v23  ;;  %v887_v44 = vmul.f32 %v883_v39, %v2164_v29  ;;  %v913_v51 = vmul.f32 %v909_v45, %v899_v46  ;;  %v971_v45 = vld [vmem:[%s2834_s2 + $0x158] sm:$0xff] }
 0x65a   :  { %v865_v40 = vadd.f32 %v861_v20, %v835_v4 }
 0x65c   :  { %v891_v48 = vadd.f32 %v887_v44, %v865_v40  ;;  %v833_v44 = vld [vmem:[%s2834_s2 + $0x88] sm:$0xff] }
 0x65e   :  { %v917_v57 = vadd.f32 %v913_v51, %v891_v48 }
 0x667   :  { %v746_v61 = vpop.xlane.xlu2 %745 }
 0x668   :  { %v752_v36 = vmul.f32 %v746_v61, %v1909_v14 }
 0x66a   :  { %v756_v2 = vadd.f32 1e-05, %v752_v36 }
 0x66c   :  { %1812 = vrsqrt.f32 %v756_v2  ;;  %vm784_vm5 = vweird.f32 %v756_v2 }
 0x66f   :  { %v749_v10 = vpop.xlane.xlu1 %748 }
 0x670   :  { %v753_v11 = vmul.f32 %v749_v10, %v1909_v14 }
 0x672   :  { %v1813_v13 = vpop.eup %1812  ;;  %v757_v15 = vadd.f32 1e-05, %v753_v11 }
 0x673   :  { %v779_v17 = vmul.f32 %v1813_v13, %v756_v2  ;;  %vm785_vm4 = vweird.f32 %v1813_v13  ;;  %v934_v2 = vrot.slane %v2126_v8, 1 }
 0x674   :  { %1814 = vrsqrt.f32 %v757_v15  ;;  %vm786_vm7 = vmor %vm784_vm5, %vm785_vm4  ;;  %vm794_vm9 = vweird.f32 %v757_v15 }
 0x675   :  { %v780_v21 = vmul.f32 %v1813_v13, %v779_v17 }
 0x677   :  { %v781_v26 = vmul.f32 0.5, %v780_v21 }
 0x679   :  { %v782_v19 = vsub.f32 1.5, %v781_v26 }
 0x67a   :  { %v1815_v31 = vpop.eup %1814 }
 0x67b   :  { %v783_v33 = vmul.f32 %v1813_v13, %v782_v19  ;;  %v789_v34 = vmul.f32 %v1815_v31, %v757_v15  ;;  %vm795_vm8 = vweird.f32 %v1815_v31  ;;  %v947_v15 = vld [vmem:[%s2834_s2 + $0x118] sm:$0xff] }
 0x67c   :  { %vm796_vm10 = vmor %vm794_vm9, %vm795_vm8  ;;  %v959_v19 = vld [vmem:[%s2834_s2 + $0x138] sm:$0xff] }
 0x67d   :  { %v787_v42 = vsel %vm786_vm7, %v1813_v13, %v783_v33  ;;  %v790_v35 = vmul.f32 %v1815_v31, %v789_v34  ;;  %v884_v13 = vld [vmem:[%s2834_s2 + $0xc0] sm:$0xff]  ;;  %v933_v33 = vrot.slane %v2129_v9, 1 }
 0x67e   :  { %v800_v43 = vmul.f32 %v787_v42, %v2102_v28  ;;  %v921_v28 = vld [vmem:[%s2834_s2 + $0xf8] sm:$0xff] }
 0x67f   :  { %v791_v30 = vmul.f32 0.5, %v790_v35  ;;  %v925_v60 = vmul.f32 %v921_v28, %v2126_v8 }
 0x680   :  { %v805_v47 = vmul.f32 %v2117_v59, %v800_v43  ;;  %v830_v43 = vld [vmem:[%s2834_s2 + $0x70] sm:$0xff] }
 0x681   :  { %v792_v50 = vsub.f32 1.5, %v791_v30 }
 0x682   :  { %v2183_v52 = vadd.f32 %v2122_v3, %v805_v47  ;;  %v935_v47 = vsel %vm932_vm11, %v933_v33, %v934_v2 }
 0x683   :  { %v793_v53 = vmul.f32 %v1815_v31, %v792_v50 }
 0x684   :  { %v822_v54 = vrot.slane %v2183_v52, 3  ;;  %v848_v18 = vrot.slane %v2183_v52, 4  ;;  %v874_v55 = vrot.slane %v2183_v52, 5  ;;  %v900_v61 = vrot.slane %v2183_v52, 7 }
 0x685   :  { %v936_v36 = vrot.slane %v2183_v52, 1  ;;  %v797_v63 = vsel %vm796_vm10, %v1815_v31, %v793_v53  ;;  %v2232_v31 = vld [vmem:[%s2834_s2] sm:$0xff]  ;;  %v856_v53 = vld [vmem:[%s2834_s2 + $0x90] sm:$0xff] }
 0x686   :  { %v801_v6 = vmul.f32 %v797_v63, %v2109_v37  ;;  %v823_v10 = vsel %vm818_vm1, %v820_v38, %v822_v54  ;;  %v849_v11 = vsel %vm844_vm2, %v846_v12, %v848_v18  ;;  %v875_v37 = vsel %vm870_vm3, %v872_v25, %v874_v55  ;;  %v910_v12 = vld [vmem:[%s2834_s2 + $0xe0] sm:$0xff] }
 0x687   :  { %v836_v17 = vmul.f32 %v832_v56, %v823_v10  ;;  %v862_v21 = vmul.f32 %v858_v49, %v849_v11  ;;  %v929_v38 = vadd.f32 %v925_v60, %v917_v57  ;;  %v937_v8 = vsel %vm932_vm11, %v934_v2, %v936_v36  ;;  %v922_v25 = vld [vmem:[%s2834_s2 + $0x100] sm:$0xff]  ;;  %v859_v56 = vld [vmem:[%s2834_s2 + $0xa8] sm:$0xff] }
 0x688   :  { %v806_v22 = vmul.f32 %v2117_v59, %v801_v6  ;;  %v901_v24 = vsel %vm896_vm6, %v898_v32, %v900_v61  ;;  %v888_v4 = vmul.f32 %v884_v13, %v875_v37  ;;  %v951_v20 = vmul.f32 %v947_v15, %v937_v8 }
 0x689   :  { %v866_v26 = vadd.f32 %v862_v21, %v836_v17  ;;  %v2235_v32 = vperm.slane %v2232_v31, 6  ;;  %v914_v40 = vmul.f32 %v910_v12, %v901_v24  ;;  %v926_v46 = vmul.f32 %v922_v25, %v2183_v52  ;;  %v960_v24 = vld [vmem:[%s2834_s2 + $0x140] sm:$0xff] }
 0x68a   :  { %v2224_v59 = vadd.f32 %v2122_v3, %v806_v22  ;;  %v955_v39 = vadd.f32 %v951_v20, %v929_v38  ;;  %v963_v48 = vmul.f32 %v959_v19, %v823_v10  ;;  %v975_v2 = vmul.f32 %v971_v45, %v849_v11  ;;  %v885_v11 = vld [vmem:[%s2834_s2 + $0xc8] sm:$0xff] }
 0x68b   :  { %v892_v34 = vadd.f32 %v888_v4, %v866_v26 }
 0x68c   :  { %v813_v3 = vrot.slane %v2224_v59, 3  ;;  %v842_v42 = vrot.slane %v2224_v59, 4  ;;  %v868_v35 = vrot.slane %v2224_v59, 5  ;;  %v894_v30 = vrot.slane %v2224_v59, 7 }
 0x68d   :  { %v938_v50 = vrot.slane %v2224_v59, 1  ;;  %v918_v49 = vadd.f32 %v914_v40, %v892_v34  ;;  %v967_v63 = vadd.f32 %v963_v48, %v955_v39 }
 0x68e   :  { %v824_v28 = vsel %vm818_vm1, %v822_v54, %v813_v3  ;;  %v2258_v51 = vsel %vm818_vm1, %v813_v3, %v819_v58  ;;  %v882_v54 = vld [vmem:[%s2834_s2 + $0xb0] sm:$0xff]  ;;  %v983_v58 = vld [vmem:[%s2834_s2 + $0x178] sm:$0xff]  ;;  %v850_v6 = vsel %vm844_vm2, %v848_v18, %v842_v42  ;;  %v2277_v10 = vsel %vm844_vm2, %v842_v42, %v845_v16  ;;  %v948_v18 = vld [vmem:[%s2834_s2 + $0x120] sm:$0xff] }
 0x68f   :  { %v834_v57 = vmul.f32 %v830_v43, %v2258_v51  ;;  %v837_v60 = vmul.f32 %v833_v44, %v824_v28  ;;  %v876_v13 = vsel %vm870_vm3, %v874_v55, %v868_v35  ;;  %v2283_v15 = vsel %vm870_vm3, %v868_v35, %v871_v27  ;;  %v908_v16 = vld [vmem:[%s2834_s2 + $0xd0] sm:$0xff]  ;;  %v911_v55 = vld [vmem:[%s2834_s2 + $0xe8] sm:$0xff] }
 0x690   :  { %v902_v17 = vsel %vm896_vm6, %v900_v61, %v894_v30  ;;  %v907_v27 = vsel %vm896_vm6, %v894_v30, %v897_v41  ;;  %v860_v21 = vmul.f32 %v856_v53, %v2277_v10  ;;  %v863_v22 = vmul.f32 %v859_v56, %v850_v6  ;;  %v920_v61 = vld [vmem:[%s2834_s2 + $0xf0] sm:$0xff]  ;;  %v923_v41 = vld [vmem:[%s2834_s2 + $0x108] sm:$0xff] }
 0x691   :  { %v886_v38 = vmul.f32 %v882_v54, %v2283_v15  ;;  %v930_v8 = vadd.f32 %v926_v46, %v918_v49  ;;  %v939_v12 = vsel %vm932_vm11, %v936_v36, %v938_v50  ;;  %v987_v26 = vmul.f32 %v983_v58, %v875_v37  ;;  %v972_v37 = vld [vmem:[%s2834_s2 + $0x160] sm:$0xff]  ;;  %v946_v42 = vld [vmem:[%s2834_s2 + $0x110] sm:$0xff]  ;;  %v949_v35 = vld [vmem:[%s2834_s2 + $0x128] sm:$0xff] }
 0x692   :  { %v864_v4 = vadd.f32 %v860_v21, %v834_v57  ;;  %v867_v20 = vadd.f32 %v863_v22, %v837_v60  ;;  %v889_v25 = vmul.f32 %v885_v11, %v876_v13  ;;  %v952_v19 = vmul.f32 %v948_v18, %v939_v12  ;;  %v984_v46 = vld [vmem:[%s2834_s2 + $0x180] sm:$0xff]  ;;  %v958_v53 = vld [vmem:[%s2834_s2 + $0x130] sm:$0xff] }
 0x693   :  { %v912_v52 = vmul.f32 %v908_v16, %v907_v27  ;;  %v915_v34 = vmul.f32 %v911_v55, %v902_v17  ;;  %v945_v36 = vsel %vm932_vm11, %v938_v50, %v933_v33  ;;  %v979_v39 = vadd.f32 %v975_v2, %v967_v63  ;;  %v970_v63 = vld [vmem:[%s2834_s2 + $0x150] sm:$0xff] }
 0x694   :  { %v890_v40 = vadd.f32 %v886_v38, %v864_v4  ;;  %v893_v3 = vadd.f32 %v889_v25, %v867_v20  ;;  %v956_v43 = vadd.f32 %v952_v19, %v930_v8  ;;  %v964_v44 = vmul.f32 %v960_v24, %v824_v28  ;;  %v982_v55 = vld [vmem:[%s2834_s2 + $0x170] sm:$0xff] }
 0x695   :  { %v924_v45 = vmul.f32 %v920_v61, %v2129_v9  ;;  %v927_v33 = vmul.f32 %v923_v41, %v2224_v59  ;;  %v991_v30 = vadd.f32 %v987_v26, %v979_v39  ;;  %v976_v49 = vmul.f32 %v972_v37, %v850_v6  ;;  %v961_v9 = vld [vmem:[%s2834_s2 + $0x148] sm:$0xff] }
 0x696   :  { %v916_v48 = vadd.f32 %v912_v52, %v890_v40  ;;  %v919_v50 = vadd.f32 %v915_v34, %v893_v3  ;;  %v968_v56 = vadd.f32 %v964_v44, %v956_v43  ;;  %v950_v57 = vmul.f32 %v946_v42, %v935_v47  ;;  %v973_v47 = vld [vmem:[%s2834_s2 + $0x168] sm:$0xff] }
 0x697   :  { %v953_v60 = vmul.f32 %v949_v35, %v945_v36  ;;  %v2337_v59 = vadd.f32 %v2235_v32, %v991_v30  ;;  %v988_v58 = vmul.f32 %v984_v46, %v876_v13  ;;  %v962_v11 = vmul.f32 %v958_v53, %v2141_v0  ;;  %v985_v0 = vld [vmem:[%s2834_s2 + $0x188] sm:$0xff] }
 0x698   :  { %v928_v28 = vadd.f32 %v924_v45, %v916_v48  ;;  %v931_v54 = vadd.f32 %v927_v33, %v919_v50  ;;  %v980_v2 = vadd.f32 %v976_v49, %v968_v56  ;;  %v965_v16 = vmul.f32 %v961_v9, %v2258_v51 }
 0x699   :  { %v2347_v6 = vmul.f32 0.70710677, %v2337_v59  ;;  %v974_v13 = vmul.f32 %v970_v63, %v2151_v23  ;;  %v977_v38 = vmul.f32 %v973_v47, %v2277_v10  ;;  %v986_v12 = vmul.f32 %v982_v55, %v2164_v29 }
 0x69a   :  { %v957_v18 = vadd.f32 %v953_v60, %v931_v54  ;;  %v992_v17 = vadd.f32 %v988_v58, %v980_v2  ;;  %v954_v27 = vadd.f32 %v950_v57, %v928_v28  ;;  %v989_v61 = vmul.f32 %v985_v0, %v2283_v15 }
 0x69b   :  { %v1016_v21 = vand.u32 2147483647, %v2347_v6 }
 0x69c   :  { %v969_v22 = vadd.f32 %v965_v16, %v957_v18  ;;  %v2360_v8 = vadd.f32 %v2235_v32, %v992_v17  ;;  %v966_v51 = vadd.f32 %v962_v11, %v954_v27 }
 0x69d   :  { %v1020_v24 = vmul.f32 0.3275911, %v1016_v21  ;;  %v1124_v48 = vsub.f32 0.0, %v1016_v21 }
 0x69e   :  { %v981_v26 = vadd.f32 %v977_v38, %v969_v22  ;;  %v2365_v23 = vmul.f32 0.70710677, %v2360_v8  ;;  %v978_v41 = vadd.f32 %v974_v13, %v966_v51 }
 0x69f   :  { %v1024_v4 = vadd.f32 1.0, %v1020_v24  ;;  %v1128_v58 = vmul.f32 %v1124_v48, %v1016_v21 }
 0x6a0   :  { %v993_v20 = vadd.f32 %v989_v61, %v981_v26  ;;  %v2368_v25 = vand.u32 2147483647, %v2365_v23  ;;  %v990_v10 = vadd.f32 %v986_v12, %v978_v41 }
 0x6a1   :  { %1816 = vrcp.f32 %v1024_v4  ;;  %v1053_v43 = vand.u32 2147483648, %v1024_v4  ;;  %v1051_v33 = vand.u32 2147483647, %v1024_v4  ;;  %vm1047_vm13 = vweird.f32 %v1024_v4 }
 0x6a2   :  { %v2371_v19 = vadd.f32 %v2235_v32, %v993_v20  ;;  %v1021_v29 = vmul.f32 0.3275911, %v2368_v25  ;;  %v2375_v52 = vadd.f32 %v2235_v32, %v990_v10  ;;  %v1125_v55 = vsub.f32 0.0, %v2368_v25 }
 0x6a3   :  { %v1054_v53 = vor.u32 1.1754944e-38, %v1053_v43  ;;  %vm1052_vm15 = vcmp.eq.f32.partialorder %v1051_v33, 8.507059e+37  ;;  %v1133_v38 = vmul.f32 1.442695, %v1128_v58 }
 0x6a4   :  { %v2378_v15 = vmul.f32 0.70710677, %v2371_v19  ;;  %v1025_v34 = vadd.f32 1.0, %v1021_v29  ;;  %v2384_v39 = vmul.f32 0.70710677, %v2375_v52  ;;  %v1129_v61 = vmul.f32 %v1125_v55, %v2368_v25 }
 0x6a6   :  { %v2381_v36 = vand.u32 2147483647, %v2378_v15  ;;  %1818 = vrcp.f32 %v1025_v34  ;;  %v2388_v32 = vand.u32 2147483647, %v2384_v39  ;;  %v1068_v57 = vand.u32 2147483648, %v1025_v34 }
 0x6a7   :  { %v1817_v37 = vpop.eup %1816  ;;  %v1066_v54 = vand.u32 2147483647, %v1025_v34  ;;  %vm1062_vm5 = vweird.f32 %v1025_v34 }
 0x6a8   :  { %v1022_v40 = vmul.f32 0.3275911, %v2381_v36  ;;  %v1043_v3 = vmul.f32 %v1817_v37, %v1024_v4  ;;  %vm1048_vm12 = vweird.f32 %v1817_v37  ;;  %v1019_v50 = vmul.f32 0.3275911, %v2388_v32 }
 0x6a9   :  { %vm1049_vm14 = vmor %vm1047_vm13, %vm1048_vm12  ;;  %v1069_v18 = vor.u32 1.1754944e-38, %v1068_v57  ;;  %vm1067_vm8 = vcmp.eq.f32.partialorder %v1066_v54, 8.507059e+37 }
 0x6aa   :  { %v1026_v42 = vadd.f32 1.0, %v1022_v40  ;;  %v1044_v35 = vsub.f32 1.0, %v1043_v3  ;;  %v2391_v60 = vadd.f32 1.0, %v1019_v50 }
 0x6ac   :  { %v1819_v44 = vpop.eup %1818  ;;  %v1045_v45 = vmul.f32 %v1817_v37, %v1044_v35  ;;  %1820 = vrcp.f32 %v1026_v42  ;;  %v1083_v0 = vand.u32 2147483648, %v1026_v42  ;;  %v1081_v51 = vand.u32 2147483647, %v1026_v42 }
 0x6ad   :  { %v1058_v46 = vmul.f32 %v1819_v44, %v1025_v34  ;;  %vm1063_vm4 = vweird.f32 %v1819_v44  ;;  %1822 = vrcp.f32 %v2391_v60  ;;  %vm1077_vm10 = vweird.f32 %v1026_v42 }
 0x6ae   :  { %v1046_v30 = vadd.f32 %v1817_v37, %v1045_v45  ;;  %vm1064_vm7 = vmor %vm1062_vm5, %vm1063_vm4  ;;  %v1084_v10 = vor.u32 1.1754944e-38, %v1083_v0  ;;  %v1126_v34 = vsub.f32 0.0, %v2381_v36  ;;  %1824 = vpow2.f32 %v1133_v38 }
 0x6af   :  { %v1059_v56 = vsub.f32 1.0, %v1058_v46  ;;  %vm1082_vm13 = vcmp.eq.f32.partialorder %v1081_v51, 8.507059e+37  ;;  %v1036_v25 = vand.u32 2147483647, %v2391_v60 }
 0x6b0   :  { %v1050_v49 = vsel %vm1049_vm14, %v1817_v37, %v1046_v30  ;;  %v1135_v30 = vmul.f32 1.442695, %v1129_v61  ;;  %v1130_v57 = vmul.f32 %v1126_v34, %v2381_v36 }
 0x6b1   :  { %v2393_v9 = vsel %vm1052_vm15, %v1054_v53, %v1050_v49  ;;  %v1060_v28 = vmul.f32 %v1819_v44, %v1059_v56  ;;  %vm1032_vm15 = vweird.f32 %v2391_v60  ;;  %vm1037_vm5 = vcmp.eq.f32.partialorder %v1036_v25, 8.507059e+37 }
 0x6b2   :  { %v1821_v63 = vpop.eup %1820  ;;  %v1088_v2 = vmul.f32 1.0614054, %v2393_v9  ;;  %1826 = vpow2.f32 %v1135_v30  ;;  %v1137_v55 = vmul.f32 1.442695, %v1130_v57 }
 0x6b3   :  { %v1061_v11 = vadd.f32 %v1819_v44, %v1060_v28  ;;  %v1073_v47 = vmul.f32 %v1821_v63, %v1026_v42  ;;  %vm1078_vm9 = vweird.f32 %v1821_v63  ;;  %v1823_v24 = vpop.eup %1822  ;;  %v1038_v42 = vand.u32 2147483648, %v2391_v60 }
 0x6b4   :  { %v1092_v16 = vadd.f32 -1.4531521, %v1088_v2  ;;  %v1028_v20 = vmul.f32 %v1823_v24, %v2391_v60  ;;  %vm1079_vm12 = vmor %vm1077_vm10, %vm1078_vm9  ;;  %vm1033_vm14 = vweird.f32 %v1823_v24  ;;  %v1825_v56 = vpop.eup %1824  ;;  %1828 = vpow2.f32 %v1137_v55  ;;  %v1213_v55 = vld [vmem:[%s2834_s2 + $0x1c0] sm:$0xff] }
 0x6b5   :  { %v1065_v17 = vsel %vm1064_vm7, %v1819_v44, %v1061_v11  ;;  %v1074_v27 = vsub.f32 1.0, %v1073_v47  ;;  %vm1034_vm4 = vmor %vm1032_vm15, %vm1033_vm14  ;;  %v1039_v28 = vor.u32 1.1754944e-38, %v1038_v42  ;;  %v1123_v47 = vsub.f32 0.0, %v2388_v32 }
 0x6b6   :  { %v2398_v13 = vsel %vm1067_vm8, %v1069_v18, %v1065_v17  ;;  %v1096_v22 = vmul.f32 %v1092_v16, %v2393_v9  ;;  %v1029_v3 = vsub.f32 1.0, %v1028_v20  ;;  %vm1008_vm7 = vcmp.ge.f32.partialorder %v2347_v6, 0.0 }
 0x6b7   :  { %v1075_v21 = vmul.f32 %v1821_v63, %v1074_v27  ;;  %v1089_v12 = vmul.f32 1.0614054, %v2398_v13  ;;  %v1127_v38 = vmul.f32 %v1123_v47, %v2388_v32  ;;  %vm1009_vm8 = vcmp.ge.f32.partialorder %v2365_v23, 0.0 }
 0x6b8   :  { %v1100_v26 = vadd.f32 1.4214138, %v1096_v22  ;;  %v1030_v33 = vmul.f32 %v1823_v24, %v1029_v3  ;;  %v2422_v20 = vperm.slane %v2232_v31, 7  ;;  %v1000_v32 = vmul.f32 0.5, %v2337_v59 }
 0x6b9   :  { %v1076_v41 = vadd.f32 %v1821_v63, %v1075_v21  ;;  %v1093_v4 = vadd.f32 -1.4531521, %v1089_v12  ;;  %v1860_v21 = vmov -1.0   ;;  %vm1010_vm9 = vcmp.ge.f32.partialorder %v2378_v15, 0.0 }
 0x6ba   :  { %v1104_v29 = vmul.f32 %v1100_v26, %v2393_v9  ;;  %v1031_v53 = vadd.f32 %v1823_v24, %v1030_v33  ;;  %v1827_v26 = vpop.eup %1826  ;;  %v1013_v23 = vsel %vm1009_vm8, 1.0, %v1860_v21  ;;  %vm1007_vm10 = vcmp.ge.f32.partialorder %v2384_v39, 0.0  ;;  %v1189_v39 = vld [vmem:[%s2834_s2 + $0x1a8] sm:$0xff] }
 0x6bb   :  { %v1080_v37 = vsel %vm1079_vm12, %v1821_v63, %v1076_v41  ;;  %v1097_v40 = vmul.f32 %v1093_v4, %v2398_v13  ;;  %v1829_v31 = vpop.eup %1828 }
 0x6bc   :  { %v1085_v35 = vsel %vm1082_vm13, %v1084_v10, %v1080_v37  ;;  %v1108_v43 = vadd.f32 -0.28449672, %v1104_v29  ;;  %v1035_v2 = vsel %vm1034_vm4, %v1823_v24, %v1031_v53  ;;  %v1131_v29 = vmul.f32 1.442695, %v1127_v38 }
 0x6bd   :  { %v1090_v44 = vmul.f32 1.0614054, %v1085_v35  ;;  %v1101_v45 = vadd.f32 1.4214138, %v1097_v40  ;;  %v1040_v11 = vsel %vm1037_vm5, %v1039_v28, %v1035_v2 }
 0x6be   :  { %v1112_v46 = vmul.f32 %v1108_v43, %v2393_v9  ;;  %v1087_v60 = vmul.f32 1.0614054, %v1040_v11  ;;  %1830 = vpow2.f32 %v1131_v29  ;;  %v1263_v29 = vld [vmem:[%s2834_s2 + $0x200] sm:$0xff] }
 0x6bf   :  { %v1094_v48 = vadd.f32 -1.4531521, %v1090_v44  ;;  %v1105_v50 = vmul.f32 %v1101_v45, %v2398_v13  ;;  %v1001_v44 = vmul.f32 0.5, %v2360_v8 }
 0x6c0   :  { %v1116_v49 = vadd.f32 0.2548296, %v1112_v46  ;;  %v1091_v0 = vadd.f32 -1.4531521, %v1087_v60 }
 0x6c1   :  { %v1098_v54 = vmul.f32 %v1094_v48, %v1085_v35  ;;  %v1109_v63 = vadd.f32 -0.28449672, %v1105_v50 }
 0x6c2   :  { %v1120_v58 = vmul.f32 %v1116_v49, %v2393_v9  ;;  %v1012_v9 = vsel %vm1008_vm7, 1.0, %v1860_v21  ;;  %v1095_v24 = vmul.f32 %v1091_v0, %v1040_v11 }
 0x6c3   :  { %v1102_v18 = vadd.f32 1.4214138, %v1098_v54  ;;  %v1113_v16 = vmul.f32 %v1109_v63, %v2398_v13  ;;  %v1002_v54 = vmul.f32 0.5, %v2371_v19  ;;  %v1188_v19 = vld [vmem:[%s2834_s2 + $0x1a0] sm:$0xff] }
 0x6c4   :  { %v1140_v36 = vmul.f32 %v1825_v56, %v1120_v58  ;;  %v1099_v4 = vadd.f32 1.4214138, %v1095_v24  ;;  %v1831_v28 = vpop.eup %1830 }
 0x6c5   :  { %v1106_v17 = vmul.f32 %v1102_v18, %v1085_v35  ;;  %v1117_v27 = vadd.f32 0.2548296, %v1113_v16 }
 0x6c6   :  { %v1144_v22 = vsub.f32 1.0, %v1140_v36  ;;  %v1103_v40 = vmul.f32 %v1099_v4, %v1040_v11 }
 0x6c7   :  { %v1110_v51 = vadd.f32 -0.28449672, %v1106_v17  ;;  %v1121_v12 = vmul.f32 %v1117_v27, %v2398_v13  ;;  %v2428_v13 = vld [vmem:[%s2834_s2 + $0x8] sm:$0xff] }
 0x6c8   :  { %v1148_v61 = vmul.f32 %v1144_v22, %v1012_v9  ;;  %v1107_v42 = vadd.f32 -0.28449672, %v1103_v40  ;;  %v2434_v45 = vperm.slane %v2428_v13, 0  ;;  %v1214_v40 = vld [vmem:[%s2834_s2 + $0x1c8] sm:$0xff] }
 0x6c9   :  { %v1114_v6 = vmul.f32 %v1110_v51, %v1085_v35  ;;  %v1141_v41 = vmul.f32 %v1827_v26, %v1121_v12  ;;  %v1238_v51 = vld [vmem:[%s2834_s2 + $0x1e0] sm:$0xff] }
 0x6ca   :  { %v1152_v10 = vadd.f32 1.0, %v1148_v61  ;;  %v1111_v30 = vmul.f32 %v1107_v42, %v1040_v11  ;;  %v1011_v61 = vsel %vm1007_vm10, 1.0, %v1860_v21 }
 0x6cb   :  { %v1118_v34 = vadd.f32 0.2548296, %v1114_v6  ;;  %v1145_v37 = vsub.f32 1.0, %v1141_v41 }
 0x6cc   :  { %v1156_v3 = vmul.f32 %v1152_v10, %v1000_v32  ;;  %v1115_v53 = vadd.f32 0.2548296, %v1111_v30 }
 0x6cd   :  { %v1122_v43 = vmul.f32 %v1118_v34, %v1085_v35  ;;  %v1149_v25 = vmul.f32 %v1145_v37, %v1013_v23  ;;  %v1014_v35 = vsel %vm1010_vm9, 1.0, %v1860_v21 }
 0x6ce   :  { %v1161_v59 = vmul.f32 %v2422_v20, %v1156_v3  ;;  %v1119_v57 = vmul.f32 %v1115_v53, %v1040_v11  ;;  %v999_v53 = vmul.f32 0.5, %v2375_v52  ;;  %v1312_v52 = vld [vmem:[%s2834_s2 + $0x260] sm:$0xff] }
 0x6cf   :  { %v1142_v33 = vmul.f32 %v1829_v31, %v1122_v43  ;;  %v1153_v46 = vadd.f32 1.0, %v1149_v25  ;;  %v1275_v43 = vld [vmem:[%s2834_s2 + $0x220] sm:$0xff] }
 0x6d0   :  { %v2439_v56 = vadd.f32 %v2434_v45, %v1161_v59  ;;  %v1139_v2 = vmul.f32 %v1831_v28, %v1119_v57 }
 0x6d1   :  { %v1146_v48 = vsub.f32 1.0, %v1142_v33  ;;  %v1157_v50 = vmul.f32 %v1153_v46, %v1001_v44  ;;  %v1300_v46 = vld [vmem:[%s2834_s2 + $0x240] sm:$0xff] }
 0x6d2   :  { %v1176_v58 = vrot.slane %v2439_v56, 3  ;;  %v1201_v47 = vrot.slane %v2439_v56, 4  ;;  %v1226_v18 = vrot.slane %v2439_v56, 5  ;;  %v1143_v27 = vsub.f32 1.0, %v1139_v2 }
 0x6d3   :  { %v1150_v8 = vmul.f32 %v1146_v48, %v1014_v35  ;;  %v1162_v49 = vmul.f32 %v2422_v20, %v1157_v50  ;;  %v1251_v26 = vrot.slane %v2439_v56, 7 }
 0x6d4   :  { %v1147_v41 = vmul.f32 %v1143_v27, %v1011_v61 }
 0x6d5   :  { %v1154_v63 = vadd.f32 1.0, %v1150_v8  ;;  %v2444_v15 = vadd.f32 %v2434_v45, %v1162_v49  ;;  %v1239_v8 = vld [vmem:[%s2834_s2 + $0x1e8] sm:$0xff] }
 0x6d6   :  { %v1151_v42 = vadd.f32 1.0, %v1147_v41 }
 0x6d7   :  { %v1158_v16 = vmul.f32 %v1154_v63, %v1002_v54  ;;  %v1178_v60 = vrot.slane %v2444_v15, 3  ;;  %v1203_v11 = vrot.slane %v2444_v15, 4  ;;  %v1228_v36 = vrot.slane %v2444_v15, 5 }
 0x6d8   :  { %v1253_v17 = vrot.slane %v2444_v15, 7  ;;  %v1288_v33 = vrot.slane %v2444_v15, 1  ;;  %v1279_v57 = vmul.f32 %v1275_v43, %v2444_v15  ;;  %v1155_v2 = vmul.f32 %v1151_v42, %v999_v53  ;;  %v1276_v42 = vld [vmem:[%s2834_s2 + $0x228] sm:$0xff] }
 0x6d9   :  { %v1163_v0 = vmul.f32 %v2422_v20, %v1158_v16  ;;  %v2464_v22 = vsel %vm818_vm1, %v1176_v58, %v1178_v60  ;;  %v2469_v38 = vsel %vm844_vm2, %v1201_v47, %v1203_v11  ;;  %v2474_v9 = vsel %vm870_vm3, %v1226_v18, %v1228_v36  ;;  %v1337_v15 = vld [vmem:[%s2834_s2 + $0x2a8] sm:$0xff] }
 0x6da   :  { %v1192_v12 = vmul.f32 %v1188_v19, %v2464_v22  ;;  %v1217_v24 = vmul.f32 %v1213_v55, %v2469_v38  ;;  %v1242_v32 = vmul.f32 %v1238_v51, %v2474_v9  ;;  %v1254_v10 = vsel %vm896_vm6, %v1251_v26, %v1253_v17  ;;  %v1324_v55 = vld [vmem:[%s2834_s2 + $0x280] sm:$0xff] }
 0x6db   :  { %v2486_v6 = vadd.f32 %v2434_v45, %v1163_v0  ;;  %v1267_v59 = vmul.f32 %v1263_v29, %v1254_v10  ;;  %v2548_v43 = vperm.slane %v2428_v13, 1 }
 0x6dc   :  { %v1221_v4 = vadd.f32 %v1217_v24, %v1192_v12  ;;  %v1336_v12 = vld [vmem:[%s2834_s2 + $0x2a0] sm:$0xff] }
 0x6dd   :  { %v1170_v34 = vrot.slane %v2486_v6, 3  ;;  %v1198_v37 = vrot.slane %v2486_v6, 4  ;;  %v1223_v23 = vrot.slane %v2486_v6, 5  ;;  %v1290_v25 = vrot.slane %v2486_v6, 1 }
 0x6de   :  { %v1246_v3 = vadd.f32 %v1242_v32, %v1221_v4  ;;  %v1248_v50 = vrot.slane %v2486_v6, 7  ;;  %v1186_v32 = vld [vmem:[%s2834_s2 + $0x190] sm:$0xff] }
 0x6df   :  { %v1180_v31 = vsel %vm818_vm1, %v1178_v60, %v1170_v34  ;;  %v1205_v44 = vsel %vm844_vm2, %v1203_v11, %v1198_v37  ;;  %v1230_v35 = vsel %vm870_vm3, %v1228_v36, %v1223_v23  ;;  %v1291_v28 = vsel %vm932_vm11, %v1288_v33, %v1290_v25  ;;  %v1264_v11 = vld [vmem:[%s2834_s2 + $0x208] sm:$0xff] }
 0x6e0   :  { %v1193_v30 = vmul.f32 %v1189_v39, %v1180_v31  ;;  %v1218_v48 = vmul.f32 %v1214_v40, %v1205_v44  ;;  %v1271_v49 = vadd.f32 %v1267_v59, %v1246_v3  ;;  %v1304_v63 = vmul.f32 %v1300_v46, %v1291_v28  ;;  %v1236_v46 = vld [vmem:[%s2834_s2 + $0x1d0] sm:$0xff] }
 0x6e1   :  { %v1243_v60 = vmul.f32 %v1239_v8, %v1230_v35  ;;  %v1255_v19 = vsel %vm896_vm6, %v1253_v17, %v1248_v50  ;;  %v1160_v36 = vmul.f32 %v2422_v20, %v1155_v2  ;;  %v1316_v0 = vmul.f32 %v1312_v52, %v1180_v31  ;;  %v1211_v20 = vld [vmem:[%s2834_s2 + $0x1b0] sm:$0xff]  ;;  %v1212_v8 = vld [vmem:[%s2834_s2 + $0x1b8] sm:$0xff] }
 0x6e2   :  { %v1222_v54 = vadd.f32 %v1218_v48, %v1193_v30  ;;  %v1283_v16 = vadd.f32 %v1279_v57, %v1271_v49  ;;  %v1268_v17 = vmul.f32 %v1264_v11, %v1255_v19  ;;  %v1328_v41 = vmul.f32 %v1324_v55, %v1205_v44  ;;  %v1261_v57 = vld [vmem:[%s2834_s2 + $0x1f0] sm:$0xff]  ;;  %v1237_v55 = vld [vmem:[%s2834_s2 + $0x1d8] sm:$0xff] }
 0x6e3   :  { %v1165_v24 = vadd.f32 %v2434_v45, %v1160_v36  ;;  %v1340_v3 = vmul.f32 %v1336_v12, %v1230_v35  ;;  %v2551_v45 = vperm.slane %v2428_v13, 2  ;;  %v1286_v28 = vrot.slane %v2439_v56, 1  ;;  %v1273_v2 = vld [vmem:[%s2834_s2 + $0x210] sm:$0xff] }
 0x6e4   :  { %v1308_v27 = vadd.f32 %v1304_v63, %v1283_v16  ;;  %v1247_v51 = vadd.f32 %v1243_v60, %v1222_v54  ;;  %v1280_v54 = vmul.f32 %v1276_v42, %v2486_v6 }
 0x6e5   :  { %v1175_v4 = vrot.slane %v1165_v24, 3  ;;  %v1200_v10 = vrot.slane %v1165_v24, 4  ;;  %v1225_v29 = vrot.slane %v1165_v24, 5  ;;  %v1250_v39 = vrot.slane %v1165_v24, 7 }
 0x6e6   :  { %v1320_v61 = vadd.f32 %v1316_v0, %v1308_v27  ;;  %v1272_v31 = vadd.f32 %v1268_v17, %v1247_v51  ;;  %v1285_v30 = vrot.slane %v1165_v24, 1  ;;  %v1298_v51 = vld [vmem:[%s2834_s2 + $0x230] sm:$0xff] }
 0x6e7   :  { %v1185_v44 = vsel %vm818_vm1, %v1170_v34, %v1175_v4  ;;  %v1210_v59 = vsel %vm844_vm2, %v1198_v37, %v1200_v10  ;;  %v1202_v35 = vsel %vm844_vm2, %v1200_v10, %v1201_v47  ;;  %v2568_v34 = vsel %vm870_vm3, %v1223_v23, %v1225_v29  ;;  %v1187_v23 = vld [vmem:[%s2834_s2 + $0x198] sm:$0xff] }
 0x6e8   :  { %v1332_v40 = vadd.f32 %v1328_v41, %v1320_v61  ;;  %v1190_v53 = vmul.f32 %v1186_v32, %v1185_v44  ;;  %v1215_v49 = vmul.f32 %v1211_v20, %v1210_v59  ;;  %v1260_v37 = vsel %vm896_vm6, %v1248_v50, %v1250_v39  ;;  %v1313_v61 = vld [vmem:[%s2834_s2 + $0x268] sm:$0xff] }
 0x6e9   :  { %v1177_v63 = vsel %vm818_vm1, %v1175_v4, %v1176_v58  ;;  %v1240_v50 = vmul.f32 %v1236_v46, %v2568_v34  ;;  %v1216_v16 = vmul.f32 %v1212_v8, %v1202_v35  ;;  %v1227_v60 = vsel %vm870_vm3, %v1225_v29, %v1226_v18  ;;  %v1301_v58 = vld [vmem:[%s2834_s2 + $0x248] sm:$0xff]  ;;  %v1322_v46 = vld [vmem:[%s2834_s2 + $0x270] sm:$0xff] }
 0x6ea   :  { %v1344_v48 = vadd.f32 %v1340_v3, %v1332_v40  ;;  %v1219_v52 = vadd.f32 %v1215_v49, %v1190_v53  ;;  %v1284_v19 = vadd.f32 %v1280_v54, %v1272_v31  ;;  %v1265_v27 = vmul.f32 %v1261_v57, %v1260_v37  ;;  %v1274_v40 = vld [vmem:[%s2834_s2 + $0x218] sm:$0xff] }
 0x6eb   :  { %v1287_v0 = vsel %vm932_vm11, %v1285_v30, %v1286_v28  ;;  %v1277_v18 = vmul.f32 %v1273_v2, %v1165_v24  ;;  %v1191_v12 = vmul.f32 %v1187_v23, %v1177_v63  ;;  %v1297_v17 = vsel %vm932_vm11, %v1290_v25, %v1285_v30  ;;  %v1262_v24 = vld [vmem:[%s2834_s2 + $0x1f8] sm:$0xff]  ;;  %v1310_v25 = vld [vmem:[%s2834_s2 + $0x250] sm:$0xff] }
 0x6ec   :  { %v1349_v47 = vadd.f32 %v2548_v43, %v1344_v48  ;;  %v1244_v36 = vadd.f32 %v1240_v50, %v1219_v52  ;;  %v1252_v4 = vsel %vm896_vm6, %v1250_v39, %v1251_v26  ;;  %v1305_v10 = vmul.f32 %v1301_v58, %v1297_v17  ;;  %v1299_v49 = vld [vmem:[%s2834_s2 + $0x238] sm:$0xff] }
 0x6ed   :  { %v1241_v6 = vmul.f32 %v1237_v55, %v1227_v60  ;;  %v1302_v20 = vmul.f32 %v1298_v51, %v1287_v0  ;;  %v1220_v29 = vadd.f32 %v1216_v16, %v1191_v12  ;;  %v1317_v42 = vmul.f32 %v1313_v61, %v1185_v44  ;;  %v1334_v44 = vld [vmem:[%s2834_s2 + $0x290] sm:$0xff]  ;;  %v1323_v16 = vld [vmem:[%s2834_s2 + $0x278] sm:$0xff] }
 0x6ee   :  { %v1354_v11 = vmul.f32 %v2551_v45, %v1349_v47  ;;  %v1269_v32 = vadd.f32 %v1265_v27, %v1244_v36  ;;  %v1309_v3 = vadd.f32 %v1305_v10, %v1284_v19  ;;  %v1266_v31 = vmul.f32 %v1262_v24, %v1252_v4 }
 0x6ef   :  { %v1245_v30 = vadd.f32 %v1241_v6, %v1220_v29  ;;  %v1289_v48 = vsel %vm932_vm11, %v1286_v28, %v1288_v33  ;;  %v1314_v8 = vmul.f32 %v1310_v25, %v1177_v63  ;;  %v1278_v47 = vmul.f32 %v1274_v40, %v2439_v56  ;;  %v1311_v63 = vld [vmem:[%s2834_s2 + $0x258] sm:$0xff] }
 0x6f0   :  { %v2608_v41 = vadd.f32 %v1354_v11, %v2085_v1  ;;  %v1325_v1 = vld [vmem:[%s2834_s2 + $0x288] sm:$0xff]  ;;  %v1281_v39 = vadd.f32 %v1277_v18, %v1269_v32  ;;  %v1321_v37 = vadd.f32 %v1317_v42, %v1309_v3  ;;  %v1326_v28 = vmul.f32 %v1322_v46, %v1202_v35  ;;  %v1335_v35 = vld [vmem:[%s2834_s2 + $0x298] sm:$0xff] }
 0x6f1   :  { %v1329_v57 = vmul.f32 %v1325_v1, %v1210_v59  ;;  %v1270_v54 = vadd.f32 %v1266_v31, %v1245_v30  ;;  %v1303_v59 = vmul.f32 %v1299_v49, %v1289_v48  ;;  %v1338_v2 = vmul.f32 %v1334_v44, %v1227_v60 }
 0x6f2   :  { %v1366_v26 = vsel %vm39_vm0, %v2608_v41, 0.0  ;;  %v1306_v53 = vadd.f32 %v1302_v20, %v1281_v39  ;;  %v1341_v56 = vmul.f32 %v1337_v15, %v2568_v34  ;;  %v1315_v58 = vmul.f32 %v1311_v63, %v2464_v22 }
 0x6f3   :  { %1367 = vadd.xlane.f32.xlu0 %v1366_v26  ;;  %v1333_v23 = vadd.f32 %v1329_v57, %v1321_v37  ;;  %v1282_v52 = vadd.f32 %v1278_v47, %v1270_v54  ;;  %v1327_v27 = vmul.f32 %v1323_v16, %v2469_v38  ;;  %v1339_v51 = vmul.f32 %v1335_v35, %v2474_v9  ;;  %v23_v37 = vld [vmem:[%s2833_s1 + $0x28] sm:$0xff]  ;;  %v22_v57 = vld [vmem:[%s2833_s1 + $0x20] sm:$0xff] }
 0x6f4   :  { %v1318_v33 = vadd.f32 %v1314_v8, %v1306_v53  ;;  %1485 = vmatpush.msrb.mxu2 %v23_v37 }
 0x6f5   :  { %v1307_v19 = vadd.f32 %v1303_v59, %v1282_v52  ;;  %v1345_v55 = vadd.f32 %v1341_v56, %v1333_v23 }
 0x6f6   :  { %v1330_v50 = vadd.f32 %v1326_v28, %v1318_v33  ;;  %1486 = vmatpush.msrb.mxu2 %v22_v57 }
 0x6f7   :  { %v1319_v36 = vadd.f32 %v1315_v58, %v1307_v19  ;;  %v1350_v34 = vadd.f32 %v2548_v43, %v1345_v55 }
 0x6f8   :  { %v1342_v11 = vadd.f32 %v1338_v2, %v1330_v50 }
 0x6f9   :  { %v1331_v0 = vadd.f32 %v1327_v27, %v1319_v36  ;;  %v1355_v38 = vmul.f32 %v2551_v45, %v1350_v34 }
 0x6fa   :  { %v1347_v60 = vadd.f32 %v2548_v43, %v1342_v11 }
 0x6fb   :  { %v1343_v12 = vadd.f32 %v1339_v51, %v1331_v0  ;;  %v2671_v24 = vadd.f32 %v1355_v38, %v2090_v5 }
 0x6fc   :  { %v1352_v18 = vmul.f32 %v2551_v45, %v1347_v60 }
 0x6fd   :  { %v1348_v17 = vadd.f32 %v2548_v43, %v1343_v12  ;;  %v1369_v43 = vsel %vm39_vm0, %v2671_v24, 0.0 }
 0x6fe   :  { %v2660_v22 = vadd.f32 %v1352_v18, %v2075_v62 }
 0x6ff   :  { %v1353_v4 = vmul.f32 %v2551_v45, %v1348_v17 }
 0x700   :  { %v1360_v61 = vsel %vm39_vm0, %v2660_v22, 0.0 }
 0x701   :  { %1361 = vadd.xlane.f32.xlu2 %v1360_v61  ;;  %v2668_v9 = vadd.f32 %v1353_v4, %v2080_v7  ;;  %v1448_v61 = vperm.slane %v2428_v13, 3 }
 0x703   :  { %v1363_v62 = vsel %vm39_vm0, %v2668_v9, 0.0 }
 0x704   :  { %1364 = vadd.xlane.f32.xlu1 %v1363_v62 }
 0x709   :  { %1370 = vadd.xlane.f32.xlu2 %v1369_v43 }
 0x766   :  { %v1368_v32 = vpop.xlane.xlu0 %1367 }
 0x767   :  { %v1374_v10 = vmul.f32 %v1368_v32, %v1909_v14  ;;  %v1453_v32 = vperm.slane %v2428_v13, 4 }
 0x769   :  { %v2679_v6 = vsub.f32 %v2608_v41, %v1374_v10 }
 0x76b   :  { %v1382_v7 = vmul.f32 %v2679_v6, %v2679_v6 }
 0x76d   :  { %v1390_v5 = vsel %vm39_vm0, %v1382_v7, 0.0 }
 0x76e   :  { %1391 = vadd.xlane.f32.xlu2 %v1390_v5 }
 0x774   :  { %v1362_v45 = vpop.xlane.xlu2 %1361 }
 0x775   :  { %v1372_v20 = vmul.f32 %v1362_v45, %v1909_v14 }
 0x777   :  { %v1376_v25 = vsub.f32 %v2660_v22, %v1372_v20  ;;  %v1365_v29 = vpop.xlane.xlu1 %1364 }
 0x778   :  { %v1373_v26 = vmul.f32 %v1365_v29, %v1909_v14 }
 0x779   :  { %v1380_v1 = vmul.f32 %v1376_v25, %v1376_v25 }
 0x77a   :  { %v2689_v40 = vsub.f32 %v2668_v9, %v1373_v26 }
 0x77b   :  { %v1384_v39 = vsel %vm39_vm0, %v1380_v1, 0.0 }
 0x77c   :  { %v1371_v3 = vpop.xlane.xlu2 %1370  ;;  %1385 = vadd.xlane.f32.xlu1 %v1384_v39  ;;  %v1381_v31 = vmul.f32 %v2689_v40, %v2689_v40 }
 0x77d   :  { %v1375_v42 = vmul.f32 %v1371_v3, %v1909_v14 }
 0x77e   :  { %v1387_v30 = vsel %vm39_vm0, %v1381_v31, 0.0 }
 0x77f   :  { %v2695_v46 = vsub.f32 %v2671_v24, %v1375_v42  ;;  %1388 = vadd.xlane.f32.xlu0 %v1387_v30 }
 0x781   :  { %v1383_v48 = vmul.f32 %v2695_v46, %v2695_v46 }
 0x783   :  { %v1393_v53 = vsel %vm39_vm0, %v1383_v48, 0.0 }
 0x784   :  { %1394 = vadd.xlane.f32.xlu1 %v1393_v53 }
 0x7e1   :  { %v1392_v8 = vpop.xlane.xlu2 %1391 }
 0x7e2   :  { %v1398_v49 = vmul.f32 %v1392_v8, %v1909_v14 }
 0x7e4   :  { %v1402_v44 = vadd.f32 1e-05, %v1398_v49 }
 0x7e6   :  { %1832 = vrsqrt.f32 %v1402_v44  ;;  %vm1430_vm14 = vweird.f32 %v1402_v44 }
 0x7ec   :  { %v1833_v52 = vpop.eup %1832 }
 0x7ed   :  { %v1425_v16 = vmul.f32 %v1833_v52, %v1402_v44  ;;  %vm1431_vm13 = vweird.f32 %v1833_v52 }
 0x7ee   :  { %vm1432_vm15 = vmor %vm1430_vm14, %vm1431_vm13 }
 0x7ef   :  { %v1386_v54 = vpop.xlane.xlu1 %1385  ;;  %v1426_v11 = vmul.f32 %v1833_v52, %v1425_v16 }
 0x7f0   :  { %v1396_v47 = vmul.f32 %v1386_v54, %v1909_v14 }
 0x7f1   :  { %v1427_v0 = vmul.f32 0.5, %v1426_v11 }
 0x7f2   :  { %v1400_v15 = vadd.f32 1e-05, %v1396_v47  ;;  %v1389_v33 = vpop.xlane.xlu0 %1388 }
 0x7f3   :  { %v1397_v28 = vmul.f32 %v1389_v33, %v1909_v14  ;;  %v1428_v38 = vsub.f32 1.5, %v1427_v0 }
 0x7f4   :  { %1834 = vrsqrt.f32 %v1400_v15  ;;  %vm1410_vm2 = vweird.f32 %v1400_v15 }
 0x7f5   :  { %v1401_v63 = vadd.f32 1e-05, %v1397_v28  ;;  %v1429_v5 = vmul.f32 %v1833_v52, %v1428_v38  ;;  %v38_v28 = vld [vmem:[%s2834_s2 + $0x68] sm:$0xff] }
 0x7f6   :  { %1682 = vmatpush.msrb.mxu0 %v38_v28 }
 0x7f7   :  { %v1395_v23 = vpop.xlane.xlu1 %1394  ;;  %1836 = vrsqrt.f32 %v1401_v63  ;;  %vm1420_vm11 = vweird.f32 %v1401_v63  ;;  %v1433_v29 = vsel %vm1432_vm15, %v1833_v52, %v1429_v5 }
 0x7f8   :  { %v1399_v59 = vmul.f32 %v1395_v23, %v1909_v14  ;;  %v1446_v39 = vmul.f32 %v1433_v29, %v2679_v6  ;;  %v1765_v6 = vld [vmem:[%s2833_s1 + $0x30] ss:$0 sm:$0xff] }
 0x7fa   :  { %v1835_v50 = vpop.eup %1834  ;;  %v1403_v2 = vadd.f32 1e-05, %v1399_v59  ;;  %v1451_v42 = vmul.f32 %v1448_v61, %v1446_v39 }
 0x7fb   :  { %v1405_v56 = vmul.f32 %v1835_v50, %v1400_v15  ;;  %vm1411_vm1 = vweird.f32 %v1835_v50 }
 0x7fc   :  { %1838 = vrsqrt.f32 %v1403_v2  ;;  %vm1412_vm3 = vmor %vm1410_vm2, %vm1411_vm1  ;;  %vm1440_vm5 = vweird.f32 %v1403_v2  ;;  %v1456_v30 = vadd.f32 %v1453_v32, %v1451_v42 }
 0x7fd   :  { %v1406_v19 = vmul.f32 %v1835_v50, %v1405_v56  ;;  %v1837_v58 = vpop.eup %1836 }
 0x7fe   :  { %v1415_v55 = vmul.f32 %v1837_v58, %v1401_v63  ;;  %vm1421_vm6 = vweird.f32 %v1837_v58 }
 0x7ff   :  { %v1407_v35 = vmul.f32 0.5, %v1406_v19  ;;  %vm1422_vm12 = vmor %vm1420_vm11, %vm1421_vm6  ;;  %v36_v19 = vld [vmem:[%s2834_s2 + $0x58] sm:$0xff] }
 0x800   :  { %v1416_v60 = vmul.f32 %v1837_v58, %v1415_v55  ;;  %v35_v55 = vld [vmem:[%s2834_s2 + $0x50] sm:$0xff] }
 0x801   :  { %v1408_v36 = vsub.f32 1.5, %v1407_v35 }
 0x802   :  { %v1839_v27 = vpop.eup %1838  ;;  %v1417_v14 = vmul.f32 0.5, %v1416_v60  ;;  %v34_v60 = vld [vmem:[%s2834_s2 + $0x48] sm:$0xff] }
 0x803   :  { %v1409_v51 = vmul.f32 %v1835_v50, %v1408_v36  ;;  %v1435_v18 = vmul.f32 %v1839_v27, %v1403_v2  ;;  %vm1441_vm4 = vweird.f32 %v1839_v27 }
 0x804   :  { %v1418_v12 = vsub.f32 1.5, %v1417_v14  ;;  %vm1442_vm7 = vmor %vm1440_vm5, %vm1441_vm4 }
 0x805   :  { %v1413_v34 = vsel %vm1412_vm3, %v1835_v50, %v1409_v51  ;;  %v1436_v4 = vmul.f32 %v1839_v27, %v1435_v18  ;;  %v37_v50 = vld [vmem:[%s2834_s2 + $0x60] sm:$0xff] }
 0x806   :  { %v1444_v17 = vmul.f32 %v1413_v34, %v1376_v25  ;;  %v1419_v62 = vmul.f32 %v1837_v58, %v1418_v12  ;;  %1683 = vmatpush.msrb.mxu0 %v37_v50  ;;  %v33_v51 = vld [vmem:[%s2834_s2 + $0x40] sm:$0xff] }
 0x807   :  { %v1437_v45 = vmul.f32 0.5, %v1436_v4 }
 0x808   :  { %v1449_v43 = vmul.f32 %v1448_v61, %v1444_v17  ;;  %v1423_v10 = vsel %vm1422_vm12, %v1837_v58, %v1419_v62  ;;  %1684 = vmatpush.msrb.mxu0 %v36_v19 }
 0x809   :  { %v1445_v20 = vmul.f32 %v1423_v10, %v2689_v40  ;;  %v1438_v1 = vsub.f32 1.5, %v1437_v45  ;;  %v31_v10 = vld [vmem:[%s2834_s2 + $0x30] sm:$0xff] }
 0x80a   :  { %v1454_v7 = vadd.f32 %v1453_v32, %v1449_v43  ;;  %1685 = vmatpush.msrb.mxu0 %v35_v55 }
 0x80b   :  { %v1450_v25 = vmul.f32 %v1448_v61, %v1445_v20  ;;  %v1439_v3 = vmul.f32 %v1839_v27, %v1438_v1 }
 0x80c   :  { %1740 = vmatmul.msk.f32.vlgmr.msrb.gmra.mxu2 %vm39_vm0, %v1454_v7  ;;  %1686 = vmatpush.msrb.mxu0 %v34_v60 }
 0x80d   :  { %v1455_v26 = vadd.f32 %v1453_v32, %v1450_v25  ;;  %v1443_v31 = vsel %vm1442_vm7, %v1839_v27, %v1439_v3 }
 0x80e   :  { %v1447_v40 = vmul.f32 %v1443_v31, %v2695_v46  ;;  %1687 = vmatpush.msrb.mxu0 %v33_v51 }
 0x810   :  { %v1452_v48 = vmul.f32 %v1448_v61, %v1447_v40  ;;  %v32_v61 = vld [vmem:[%s2834_s2 + $0x38] sm:$0xff] }
 0x811   :  { %1688 = vmatpush.msrb.mxu0 %v32_v61 }
 0x812   :  { %v1457_v53 = vadd.f32 %v1453_v32, %v1452_v48 }
 0x813   :  { %1689 = vmatpush.msrb.mxu0 %v31_v10 }
 0x814   :  { %1741 = vmatmul.msk.f32.gmra.mxu2 %vm39_vm0, %v1455_v26 }
 0x81c   :  { %1742 = vmatmul.msk.f32.gmra.mxu2 %vm39_vm0, %v1456_v30 }
 0x824   :  { %1743 = vmatmul.msk.f32.gmra.mxu2 %vm39_vm0, %v1457_v53 }
 0x88f   :  { %v1488_v8 = vpop.f32.mrf.mxu2 }
 0x890   :  { %v2723_v49 = vadd.f32 %v1765_v6, %v1488_v8 }
 0x892   :  { %v2726_v37 = vmul.f32 0.70710677, %v2723_v49 }
 0x894   :  { %v1516_v57 = vand.u32 2147483647, %v2726_v37  ;;  %vm1508_vm4 = vcmp.ge.f32.partialorder %v2726_v37, 0.0 }
 0x896   :  { %v1520_v44 = vmul.f32 0.3275911, %v1516_v57  ;;  %v1624_v62 = vsub.f32 0.0, %v1516_v57 }
 0x897   :  { %v1491_v46 = vpop.f32.mrf.mxu2 }
 0x898   :  { %v1524_v54 = vadd.f32 1.0, %v1520_v44  ;;  %v2729_v47 = vadd.f32 %v1765_v6, %v1491_v46  ;;  %v1628_v25 = vmul.f32 %v1624_v62, %v1516_v57 }
 0x89a   :  { %1840 = vrcp.f32 %v1524_v54  ;;  %v2732_v15 = vmul.f32 0.70710677, %v2729_v47  ;;  %v1539_v11 = vand.u32 2147483648, %v1524_v54  ;;  %v1537_v27 = vand.u32 2147483647, %v1524_v54 }
 0x89b   :  { %vm1533_vm9 = vweird.f32 %v1524_v54 }
 0x89c   :  { %v2735_v33 = vand.u32 2147483647, %v2732_v15  ;;  %v1540_v34 = vor.u32 1.1754944e-38, %v1539_v11  ;;  %vm1538_vm1 = vcmp.eq.f32.partialorder %v1537_v27, 8.507059e+37 }
 0x89e   :  { %v1521_v63 = vmul.f32 0.3275911, %v2735_v33  ;;  %v1625_v28 = vsub.f32 0.0, %v2735_v33 }
 0x89f   :  { %v1494_v23 = vpop.f32.mrf.mxu2 }
 0x8a0   :  { %v1841_v52 = vpop.eup %1840  ;;  %v2741_v59 = vadd.f32 %v1765_v6, %v1494_v23  ;;  %v1525_v16 = vadd.f32 1.0, %v1521_v63  ;;  %v1629_v11 = vmul.f32 %v1625_v28, %v2735_v33 }
 0x8a1   :  { %v1529_v2 = vmul.f32 %v1841_v52, %v1524_v54  ;;  %vm1534_vm8 = vweird.f32 %v1841_v52 }
 0x8a2   :  { %v2747_v56 = vmul.f32 0.70710677, %v2741_v59  ;;  %1842 = vrcp.f32 %v1525_v16  ;;  %vm1535_vm10 = vmor %vm1533_vm9, %vm1534_vm8  ;;  %v1554_v29 = vand.u32 2147483648, %v1525_v16  ;;  %v1552_v39 = vand.u32 2147483647, %v1525_v16 }
 0x8a3   :  { %v1530_v58 = vsub.f32 1.0, %v1529_v2  ;;  %vm1548_vm3 = vweird.f32 %v1525_v16 }
 0x8a4   :  { %v2753_v35 = vand.u32 2147483647, %v2747_v56  ;;  %v1555_v53 = vor.u32 1.1754944e-38, %v1554_v29  ;;  %vm1553_vm11 = vcmp.eq.f32.partialorder %v1552_v39, 8.507059e+37  ;;  %v1512_v39 = vsel %vm1508_vm4, 1.0, %v1860_v21 }
 0x8a5   :  { %v1531_v36 = vmul.f32 %v1841_v52, %v1530_v58 }
 0x8a6   :  { %v1522_v0 = vmul.f32 0.3275911, %v2753_v35  ;;  %v1626_v51 = vsub.f32 0.0, %v2753_v35 }
 0x8a7   :  { %v1532_v18 = vadd.f32 %v1841_v52, %v1531_v36  ;;  %v1497_v14 = vpop.f32.mrf.mxu2 }
 0x8a8   :  { %v1526_v12 = vadd.f32 1.0, %v1522_v0  ;;  %v2765_v17 = vadd.f32 %v1765_v6, %v1497_v14  ;;  %v1843_v38 = vpop.eup %1842  ;;  %v1632_v6 = vmul.f32 1.442695, %v1628_v25 }
 0x8a9   :  { %v1536_v4 = vsel %vm1535_vm10, %v1841_v52, %v1532_v18  ;;  %v1544_v32 = vmul.f32 %v1843_v38, %v1525_v16  ;;  %vm1549_vm2 = vweird.f32 %v1843_v38  ;;  %vm1661_vm10 = vcmask 523264  }
 0x8aa   :  { %v1541_v43 = vsel %vm1538_vm1, %v1540_v34, %v1536_v4  ;;  %1844 = vrcp.f32 %v1526_v12  ;;  %v2774_v45 = vmul.f32 0.70710677, %v2765_v17  ;;  %vm1550_vm6 = vmor %vm1548_vm3, %vm1549_vm2  ;;  %v1569_v63 = vand.u32 2147483648, %v1526_v12 }
 0x8ab   :  { %v1588_v7 = vmul.f32 1.0614054, %v1541_v43  ;;  %v1545_v5 = vsub.f32 1.0, %v1544_v32  ;;  %v1567_v23 = vand.u32 2147483647, %v1526_v12  ;;  %vm1563_vm13 = vweird.f32 %v1526_v12 }
 0x8ac   :  { %v2777_v26 = vand.u32 2147483647, %v2774_v45  ;;  %v1570_v55 = vor.u32 1.1754944e-38, %v1569_v63  ;;  %v1634_v4 = vmul.f32 1.442695, %v1629_v11  ;;  %vm1509_vm1 = vcmp.ge.f32.partialorder %v2732_v15, 0.0 }
 0x8ad   :  { %v1592_v20 = vadd.f32 -1.4531521, %v1588_v7  ;;  %v1546_v1 = vmul.f32 %v1843_v38, %v1545_v5  ;;  %vm1568_vm15 = vcmp.eq.f32.partialorder %v1567_v23, 8.507059e+37  ;;  %v1630_v7 = vmul.f32 %v1626_v51, %v2753_v35 }
 0x8ae   :  { %v1523_v31 = vmul.f32 0.3275911, %v2777_v26  ;;  %vm1510_vm2 = vcmp.ge.f32.partialorder %v2747_v56, 0.0  ;;  %vm1511_vm3 = vcmp.ge.f32.partialorder %v2774_v45, 0.0 }
 0x8af   :  { %v1596_v3 = vmul.f32 %v1592_v20, %v1541_v43  ;;  %v1547_v30 = vadd.f32 %v1843_v38, %v1546_v1 }
 0x8b0   :  { %v1845_v42 = vpop.eup %1844  ;;  %v1527_v8 = vadd.f32 1.0, %v1523_v31 }
 0x8b1   :  { %v1600_v40 = vadd.f32 1.4214138, %v1596_v3  ;;  %v1559_v48 = vmul.f32 %v1845_v42, %v1526_v12  ;;  %v1551_v57 = vsel %vm1550_vm6, %v1843_v38, %v1547_v30  ;;  %vm1564_vm12 = vweird.f32 %v1845_v42 }
 0x8b2   :  { %v2780_v54 = vsel %vm1553_vm11, %v1555_v53, %v1551_v57  ;;  %1846 = vrcp.f32 %v1527_v8  ;;  %vm1565_vm14 = vmor %vm1563_vm13, %vm1564_vm12  ;;  %v1584_v5 = vand.u32 2147483648, %v1527_v8  ;;  %v1582_v20 = vand.u32 2147483647, %v1527_v8 }
 0x8b3   :  { %v1604_v44 = vmul.f32 %v1600_v40, %v1541_v43  ;;  %v1560_v46 = vsub.f32 1.0, %v1559_v48  ;;  %v1589_v2 = vmul.f32 1.0614054, %v2780_v54  ;;  %1848 = vpow2.f32 %v1632_v6 }
 0x8b4   :  { %1850 = vpow2.f32 %v1634_v4  ;;  %vm1578_vm7 = vweird.f32 %v1527_v8  ;;  %v1500_v30 = vmul.f32 0.5, %v2723_v49  ;;  %v1636_v40 = vmul.f32 1.442695, %v1630_v7 }
 0x8b5   :  { %v1608_v52 = vadd.f32 -0.28449672, %v1604_v44  ;;  %v1561_v50 = vmul.f32 %v1845_v42, %v1560_v46  ;;  %v1593_v19 = vadd.f32 -1.4531521, %v1589_v2  ;;  %vm1583_vm9 = vcmp.eq.f32.partialorder %v1582_v20, 8.507059e+37 }
 0x8b6   :  { %v1585_v35 = vor.u32 1.1754944e-38, %v1584_v5  ;;  %v1627_v44 = vsub.f32 0.0, %v2777_v26  ;;  %1852 = vpow2.f32 %v1636_v40  ;;  %v1515_v20 = vsel %vm1511_vm3, 1.0, %v1860_v21 }
 0x8b7   :  { %v1612_v16 = vmul.f32 %v1608_v52, %v1541_v43  ;;  %v1562_v58 = vadd.f32 %v1845_v42, %v1561_v50  ;;  %v1597_v27 = vmul.f32 %v1593_v19, %v2780_v54 }
 0x8b8   :  { %v1847_v0 = vpop.eup %1846 }
 0x8b9   :  { %v1616_v36 = vadd.f32 0.2548296, %v1612_v16  ;;  %v1566_v60 = vsel %vm1565_vm14, %v1845_v42, %v1562_v58  ;;  %v1574_v34 = vmul.f32 %v1847_v0, %v1527_v8  ;;  %v1601_v61 = vadd.f32 1.4214138, %v1597_v27  ;;  %v1849_v12 = vpop.eup %1848 }
 0x8ba   :  { %v1571_v18 = vsel %vm1568_vm15, %v1570_v55, %v1566_v60  ;;  %vm1579_vm5 = vweird.f32 %v1847_v0  ;;  %v1851_v52 = vpop.eup %1850  ;;  %v1631_v16 = vmul.f32 %v1627_v44, %v2777_v26  ;;  %v1513_v55 = vsel %vm1509_vm1, 1.0, %v1860_v21 }
 0x8bb   :  { %v1620_v14 = vmul.f32 %v1616_v36, %v1541_v43  ;;  %v1590_v38 = vmul.f32 1.0614054, %v1571_v18  ;;  %v1575_v62 = vsub.f32 1.0, %v1574_v34  ;;  %v1605_v32 = vmul.f32 %v1601_v61, %v2780_v54  ;;  %vm1580_vm8 = vmor %vm1578_vm7, %vm1579_vm5 }
 0x8bc   :  { %v1853_v60 = vpop.eup %1852  ;;  %v1638_v51 = vmul.f32 1.442695, %v1631_v16 }
 0x8bd   :  { %v1640_v33 = vmul.f32 %v1849_v12, %v1620_v14  ;;  %v1594_v10 = vadd.f32 -1.4531521, %v1590_v38  ;;  %v1576_v29 = vmul.f32 %v1847_v0, %v1575_v62  ;;  %v1609_v43 = vadd.f32 -0.28449672, %v1605_v32 }
 0x8be   :  { %v1514_v12 = vsel %vm1510_vm2, 1.0, %v1860_v21  ;;  %1854 = vpow2.f32 %v1638_v51 }
 0x8bf   :  { %v1644_v25 = vsub.f32 1.0, %v1640_v33  ;;  %v1598_v1 = vmul.f32 %v1594_v10, %v1571_v18  ;;  %v1613_v3 = vmul.f32 %v1609_v43, %v2780_v54  ;;  %v1577_v31 = vadd.f32 %v1847_v0, %v1576_v29 }
 0x8c0   :  { %v1502_v33 = vmul.f32 0.5, %v2741_v59  ;;  %v1503_v29 = vmul.f32 0.5, %v2765_v17  ;;  %v1660_v59 = vperm.slane %v2428_v13, 5 }
 0x8c1   :  { %v1648_v37 = vmul.f32 %v1644_v25, %v1512_v39  ;;  %v1602_v42 = vadd.f32 1.4214138, %v1598_v1  ;;  %v1617_v53 = vadd.f32 0.2548296, %v1613_v3  ;;  %v1581_v57 = vsel %vm1580_vm8, %v1847_v0, %v1577_v31 }
 0x8c2   :  { %v1586_v8 = vsel %vm1583_vm9, %v1585_v35, %v1581_v57  ;;  %v1501_v0 = vmul.f32 0.5, %v2729_v47  ;;  %v1703_v39 = vperm.slane %v2428_v13, 6 }
 0x8c3   :  { %v1652_v48 = vadd.f32 1.0, %v1648_v37  ;;  %v1606_v6 = vmul.f32 %v1602_v42, %v1571_v18  ;;  %v1621_v28 = vmul.f32 %v1617_v53, %v2780_v54  ;;  %v1591_v23 = vmul.f32 1.0614054, %v1586_v8 }
 0x8c4   :  { %v1855_v56 = vpop.eup %1854 }
 0x8c5   :  { %v1656_v46 = vmul.f32 %v1652_v48, %v1500_v30  ;;  %v1610_v63 = vadd.f32 -0.28449672, %v1606_v6  ;;  %v1641_v49 = vmul.f32 %v1851_v52, %v1621_v28  ;;  %v1595_v2 = vadd.f32 -1.4531521, %v1591_v23 }
 0x8c7   :  { %1744 = vmatmul.msk.f32.vlgmr.msrb.gmra.mxu0 %vm1661_vm10, %v1656_v46  ;;  %v1614_v50 = vmul.f32 %v1610_v63, %v1571_v18  ;;  %v1645_v19 = vsub.f32 1.0, %v1641_v49  ;;  %v1599_v11 = vmul.f32 %v1595_v2, %v1586_v8 }
 0x8c9   :  { %v1618_v58 = vadd.f32 0.2548296, %v1614_v50  ;;  %v1649_v36 = vmul.f32 %v1645_v19, %v1513_v55  ;;  %v1603_v27 = vadd.f32 1.4214138, %v1599_v11 }
 0x8cb   :  { %v1622_v54 = vmul.f32 %v1618_v58, %v1571_v18  ;;  %v1653_v15 = vadd.f32 1.0, %v1649_v36  ;;  %v1607_v34 = vmul.f32 %v1603_v27, %v1586_v8 }
 0x8cd   :  { %v1642_v14 = vmul.f32 %v1853_v60, %v1622_v54  ;;  %v1657_v61 = vmul.f32 %v1653_v15, %v1501_v0  ;;  %v1611_v26 = vadd.f32 -0.28449672, %v1607_v34 }
 0x8cf   :  { %v1646_v38 = vsub.f32 1.0, %v1642_v14  ;;  %1745 = vmatmul.msk.f32.gmra.mxu0 %vm1661_vm10, %v1657_v61  ;;  %v1615_v18 = vmul.f32 %v1611_v26, %v1586_v8 }
 0x8d1   :  { %v1650_v4 = vmul.f32 %v1646_v38, %v1514_v12  ;;  %v1619_v47 = vadd.f32 0.2548296, %v1615_v18 }
 0x8d3   :  { %v1654_v62 = vadd.f32 1.0, %v1650_v4  ;;  %v1623_v10 = vmul.f32 %v1619_v47, %v1586_v8 }
 0x8d5   :  { %v1658_v32 = vmul.f32 %v1654_v62, %v1502_v33  ;;  %v1643_v7 = vmul.f32 %v1855_v56, %v1623_v10 }
 0x8d7   :  { %1746 = vmatmul.msk.f32.gmra.mxu0 %vm1661_vm10, %v1658_v32  ;;  %v1647_v5 = vsub.f32 1.0, %v1643_v7 }
 0x8d9   :  { %v1651_v25 = vmul.f32 %v1647_v5, %v1515_v20 }
 0x8db   :  { %v1655_v43 = vadd.f32 1.0, %v1651_v25 }
 0x8dd   :  { %v1659_v1 = vmul.f32 %v1655_v43, %v1503_v29 }
 0x8df   :  { %1747 = vmatmul.msk.f32.gmra.mxu0 %vm1661_vm10, %v1659_v1 }
 0x944   :  { %v1691_v37 = vpop.f32.mrf.mxu0 }
 0x945   :  { %v1692_v3 = vadd.f32 %v1691_v37, %v1660_v59 }
 0x947   :  { %v1704_v45 = vmul.f32 %v1703_v39, %v1692_v3 }
 0x949   :  { %v1708_v42 = vadd.f32 %v1704_v45, %v2660_v22 }
 0x94b   :  { %1712 = vst.msk [vmem:[%s2835_s3] sm:$0xff] %vm39_vm0, %v1708_v42 }
 0x94c   :  { %v1694_v21 = vpop.f32.mrf.mxu0 }
 0x94d   :  { %v1695_v17 = vadd.f32 %v1694_v21, %v1660_v59 }
 0x94f   :  { %v1705_v31 = vmul.f32 %v1703_v39, %v1695_v17 }
 0x951   :  { %v1709_v30 = vadd.f32 %v1705_v31, %v2668_v9 }
 0x953   :  { %1713 = vst.msk [vmem:[%s2835_s3 + $0x8] sm:$0xff] %vm39_vm0, %v1709_v30 }
 0x954   :  { %v1697_v13 = vpop.f32.mrf.mxu0 }
 0x955   :  { %v1698_v40 = vadd.f32 %v1697_v13, %v1660_v59 }
 0x957   :  { %v1706_v35 = vmul.f32 %v1703_v39, %v1698_v40 }
 0x959   :  { %v1710_v22 = vadd.f32 %v1706_v35, %v2608_v41 }
 0x95b   :  { %1714 = vst.msk [vmem:[%s2835_s3 + $0x10] sm:$0xff] %vm39_vm0, %v1710_v22 }
 0x95c   :  { %v1700_v48 = vpop.f32.mrf.mxu0 }
 0x95d   :  { %v1701_v53 = vadd.f32 %v1700_v48, %v1660_v59 }
 0x95f   :  { %v1707_v6 = vmul.f32 %v1703_v39, %v1701_v53 }
 0x961   :  { %v1711_v9 = vadd.f32 %v1707_v6, %v2671_v24 }
 0x963   :  { %1715 = vst.msk [vmem:[%s2835_s3 + $0x18] sm:$0xff] %vm39_vm0, %v1711_v9 }

</bundles_post_ra>
